<compile_context>
chip_gen: v7x
topology: tpu7x:2x2x1
jax: 0.10.0
libtpu: 0.0.40
codegen_flags: <defaults>
</compile_context>

<pallas_src>
import jax
import jax.numpy as jnp
from jax.experimental import pallas as pl
from jax.experimental.pallas import tpu as pltpu


# ----------------------------------------------------------------------------
# Fused LSTM + Linear kernel (single invocation, no grid)
# ----------------------------------------------------------------------------
def predictor_kernel(x_ref, wih_ref, whh_ref, b_ref, h0_ref, c0_ref,
                     wout_ref, bout_ref,
                     out_ref, hn_ref, cn_ref,
                     xw_sc, last_sc):
    """
    x_ref    : (S*B, I)   time-major flattened inputs
    wih_ref  : (4, I, H)  per-gate input weights (gate order i, f, g, o)
    whh_ref  : (4, H, H)  per-gate hidden weights
    b_ref    : (4, 1, H)  per-gate bias (b_ih + b_hh)
    h0_ref   : (B, H)     initial hidden state
    c0_ref   : (B, H)     initial cell state
    wout_ref : (H, O)     output Linear weight (transposed)
    bout_ref : (1, O)     output Linear bias
    out_ref  : (S, O)     Linear(output[:, -1, :])
    hn_ref   : (B, H)     final hidden state
    cn_ref   : (B, H)     final cell state
    xw_sc    : (4, S*B, H) VMEM scratch: precomputed input projection
    last_sc  : (S, H)      VMEM scratch: h_t[last batch row] per step
    """
    B, H = h0_ref.shape
    S = last_sc.shape[0]

    # ---- Prologue: hoist the input projection out of the recurrence.
    #      One (S*B, I) x (I, H) matmul per gate; gates stay on a leading
    #      axis so the hot loop never slices lanes at non-128 offsets.
    x2 = x_ref[...]                                          # (S*B, I)
    for g in range(4):
        xw_sc[g, :, :] = (jnp.dot(x2, wih_ref[g],
                                  preferred_element_type=jnp.float32)
                          + b_ref[g])

    # Hidden-to-hidden weights are reused every step: load once, keep in vregs.
    whh_i = whh_ref[0]
    whh_f = whh_ref[1]
    whh_g = whh_ref[2]
    whh_o = whh_ref[3]

    # ---- Sequential recurrence; h/c carried in registers (no per-step VMEM
    #      round trip, no per-step grid launch, no per-step h_n/c_n stores).
    def step(t, carry):
        h, c = carry
        row = t * B
        i_g = jax.nn.sigmoid(
            xw_sc[0, pl.ds(row, B), :]
            + jnp.dot(h, whh_i, preferred_element_type=jnp.float32))
        f_g = jax.nn.sigmoid(
            xw_sc[1, pl.ds(row, B), :]
            + jnp.dot(h, whh_f, preferred_element_type=jnp.float32))
        g_g = jnp.tanh(
            xw_sc[2, pl.ds(row, B), :]
            + jnp.dot(h, whh_g, preferred_element_type=jnp.float32))
        o_g = jax.nn.sigmoid(
            xw_sc[3, pl.ds(row, B), :]
            + jnp.dot(h, whh_o, preferred_element_type=jnp.float32))
        c_new = f_g * c + i_g * g_g
        h_new = o_g * jnp.tanh(c_new)
        # batch_first=False: output[:, -1, :] picks the LAST BATCH row at
        # every time step -> collect h_t[B-1] for the fused Linear epilogue.
        last_sc[pl.ds(t, 1), :] = h_new[B - 1:B, :]
        return (h_new, c_new)

    h_fin, c_fin = jax.lax.fori_loop(
        0, S, step, (h0_ref[...], c0_ref[...]), unroll=True)

    # ---- Epilogue: fused output Linear + single write of the final state.
    out_ref[...] = (jnp.dot(last_sc[...], wout_ref[...],
                            preferred_element_type=jnp.float32)
                    + bout_ref[...])
    hn_ref[...] = h_fin
    cn_ref[...] = c_fin


# ----------------------------------------------------------------------------
# Predictor forward (matches the PyTorch module semantics)
# ----------------------------------------------------------------------------
def _predictor_forward(params, inputs, hidden0):
    """inputs: (S, B, I); hidden0 = (h0, c0) each (1, B, H).
    Returns (output (S, O), (h_n (1,B,H), c_n (1,B,H)))."""
    h0, c0 = hidden0
    S, B, I = inputs.shape
    H = h0.shape[-1]
    O = params["w_out_t"].shape[-1]

    x2d = inputs.reshape(S * B, I)   # row-major: rows [t*B : (t+1)*B] == step t

    out, h_n, c_n = pl.pallas_call(
        predictor_kernel,
        out_shape=(
            jax.ShapeDtypeStruct((S, O), jnp.float32),
            jax.ShapeDtypeStruct((B, H), jnp.float32),
            jax.ShapeDtypeStruct((B, H), jnp.float32),
        ),
        in_specs=[
            pl.BlockSpec((S * B, I), lambda: (0, 0)),
            pl.BlockSpec((4, I, H), lambda: (0, 0, 0)),
            pl.BlockSpec((4, H, H), lambda: (0, 0, 0)),
            pl.BlockSpec((4, 1, H), lambda: (0, 0, 0)),
            pl.BlockSpec((B, H), lambda: (0, 0)),
            pl.BlockSpec((B, H), lambda: (0, 0)),
            pl.BlockSpec((H, O), lambda: (0, 0)),
            pl.BlockSpec((1, O), lambda: (0, 0)),
        ],
        out_specs=(
            pl.BlockSpec((S, O), lambda: (0, 0)),
            pl.BlockSpec((B, H), lambda: (0, 0)),
            pl.BlockSpec((B, H), lambda: (0, 0)),
        ),
        scratch_shapes=[
            pltpu.VMEM((4, S * B, H), jnp.float32),   # precomputed x-projection
            pltpu.VMEM((S, H), jnp.float32),          # last-batch-row per step
        ],
    )(x2d, params["w_ih_g"], params["w_hh_g"], params["b_g"],
      h0[0], c0[0], params["w_out_t"], params["b_out"])

    return out, (h_n[None], c_n[None])


predictor_forward = jax.jit(_predictor_forward)


# ----------------------------------------------------------------------------
# Pure-JAX reference (PyTorch LSTM math, packed-gate form) for verification
# ----------------------------------------------------------------------------
def predictor_ref(w_ih, w_hh, b_ih, b_hh, w_out, b_out, inputs, hidden0):
    h0, c0 = hidden0
    h = h0[0]
    c = c0[0]
    H = h.shape[-1]
    wih_t = w_ih.T
    whh_t = w_hh.T
    bias = b_ih + b_hh
    hp = jax.lax.Precision.HIGHEST
    hs = []
    for t in range(inputs.shape[0]):
        gates = (jnp.dot(inputs[t], wih_t, precision=hp)
                 + jnp.dot(h, whh_t, precision=hp) + bias)
        i_g = jax.nn.sigmoid(gates[:, 0 * H:1 * H])
        f_g = jax.nn.sigmoid(gates[:, 1 * H:2 * H])
        g_g = jnp.tanh(gates[:, 2 * H:3 * H])
        o_g = jax.nn.sigmoid(gates[:, 3 * H:4 * H])
        c = f_g * c + i_g * g_g
        h = o_g * jnp.tanh(c)
        hs.append(h)
    all_h = jnp.stack(hs, axis=0)
    last = all_h[:, -1, :]                          # (S, H)
    out = jnp.dot(last, w_out.T, precision=hp) + b_out
    return out, (h[None], c[None])


if __name__ == "__main__":
    inputDim, hiddenDim, outputDim = 4, 32, 1
    seq_len, batch = 8, 2

    key = jax.random.PRNGKey(0)
    keys = jax.random.split(key, 9)

    # PyTorch-shaped parameters (gate order i, f, g, o along the 4H axis)
    w_ih = 0.1 * jax.random.normal(keys[0], (4 * hiddenDim, inputDim), jnp.float32)
    w_hh = 0.1 * jax.random.normal(keys[1], (4 * hiddenDim, hiddenDim), jnp.float32)
    b_ih = 0.1 * jax.random.normal(keys[2], (4 * hiddenDim,), jnp.float32)
    b_hh = 0.1 * jax.random.normal(keys[3], (4 * hiddenDim,), jnp.float32)
    w_out = 0.1 * jax.random.normal(keys[4], (outputDim, hiddenDim), jnp.float32)
    b_out = 0.1 * jax.random.normal(keys[5], (outputDim,), jnp.float32)

    # Kernel-layout parameters: gates split onto a leading axis, transposed for
    # right-multiplication (x @ W^T style).
    params = {
        "w_ih_g": w_ih.reshape(4, hiddenDim, inputDim).transpose(0, 2, 1),  # (4, I, H)
        "w_hh_g": w_hh.reshape(4, hiddenDim, hiddenDim).transpose(0, 2, 1), # (4, H, H)
        "b_g": (b_ih + b_hh).reshape(4, 1, hiddenDim),                      # (4, 1, H)
        "w_out_t": w_out.T,                                                 # (H, O)
        "b_out": b_out[None, :],                                            # (1, O)
    }

    # Inputs: (seq_len, batch, inputDim); hidden0 = (h0, c0) each (1, batch, hiddenDim)
    inputs = jax.random.normal(keys[6], (seq_len, batch, inputDim), jnp.float32)
    h0 = jax.random.normal(keys[7], (1, batch, hiddenDim), jnp.float32)
    c0 = jax.random.normal(keys[8], (1, batch, hiddenDim), jnp.float32)

    out, (h_n, c_n) = predictor_forward(params, inputs, (h0, c0))
    jax.block_until_ready(out)
    jax.block_until_ready(h_n)
    jax.block_until_ready(c_n)

    out_ref, (h_ref, c_ref) = predictor_ref(
        w_ih, w_hh, b_ih, b_hh, w_out, b_out, inputs, (h0, c0))

    assert out.shape == (seq_len, outputDim)
    assert h_n.shape == (1, batch, hiddenDim) and c_n.shape == (1, batch, hiddenDim)
    assert jnp.allclose(out, out_ref, atol=1e-4, rtol=1e-4)
    assert jnp.allclose(h_n, h_ref, atol=1e-4, rtol=1e-4)
    assert jnp.allclose(c_n, c_ref, atol=1e-4, rtol=1e-4)

    print("KERNEL_OK")
</pallas_src>

<mosaic_0001>
module attributes {stable_mosaic.version = 11 : i64} {
  func.func @predictor_kernel(%arg0: memref<16x4xf32, #tpu.memory_space<vmem>>, %arg1: memref<4x4x32xf32, #tpu.memory_space<vmem>>, %arg2: memref<4x32x32xf32, #tpu.memory_space<vmem>>, %arg3: memref<4x1x32xf32, #tpu.memory_space<vmem>>, %arg4: memref<2x32xf32, #tpu.memory_space<vmem>>, %arg5: memref<2x32xf32, #tpu.memory_space<vmem>>, %arg6: memref<32x1xf32, #tpu.memory_space<vmem>>, %arg7: memref<1x1xf32, #tpu.memory_space<vmem>>, %arg8: memref<8x1xf32, #tpu.memory_space<vmem>>, %arg9: memref<2x32xf32, #tpu.memory_space<vmem>>, %arg10: memref<2x32xf32, #tpu.memory_space<vmem>>, %arg11: memref<4x16x32xf32, #tpu.memory_space<vmem>>, %arg12: memref<8x32xf32, #tpu.memory_space<vmem>>) attributes {dimension_semantics = [], scalar_prefetch = 0 : i64, scratch_operands = 2 : i64, tpu.core_type = #tpu.core_type<tc>} {
    %c0 = arith.constant 0 : index
    %c0_0 = arith.constant 0 : index
    %0 = vector.load %arg0[%c0, %c0_0] : memref<16x4xf32, #tpu.memory_space<vmem>>, vector<16x4xf32>
    %c0_1 = arith.constant 0 : index
    %c0_2 = arith.constant 0 : index
    %c0_3 = arith.constant 0 : index
    %1 = vector.load %arg1[%c0_1, %c0_2, %c0_3] : memref<4x4x32xf32, #tpu.memory_space<vmem>>, vector<1x4x32xf32>
    %2 = vector.shape_cast %1 : vector<1x4x32xf32> to vector<4x32xf32>
    %cst = arith.constant dense<0.000000e+00> : vector<16x32xf32>
    %3 = tpu.matmul %0, %2, %cst {dimension_numbers = #tpu.dot_dimension_numbers<[1], [0], [0], [1], [0, 0, 1, 1], [], []>} : vector<16x4xf32>, vector<4x32xf32>, vector<16x32xf32> -> vector<16x32xf32>
    %c0_4 = arith.constant 0 : index
    %c0_5 = arith.constant 0 : index
    %c0_6 = arith.constant 0 : index
    %4 = vector.load %arg3[%c0_4, %c0_5, %c0_6] : memref<4x1x32xf32, #tpu.memory_space<vmem>>, vector<1x1x32xf32>
    %5 = vector.shape_cast %4 : vector<1x1x32xf32> to vector<1x32xf32>
    %6 = vector.broadcast %5 : vector<1x32xf32> to vector<16x32xf32>
    %7 = arith.addf %3, %6 : vector<16x32xf32>
    %c0_7 = arith.constant 0 : index
    %c0_8 = arith.constant 0 : index
    %c0_9 = arith.constant 0 : index
    %8 = vector.load %arg11[%c0_7, %c0_8, %c0_9] : memref<4x16x32xf32, #tpu.memory_space<vmem>>, vector<1x16x32xf32>
    %9 = vector.shape_cast %8 : vector<1x16x32xf32> to vector<16x32xf32>
    %10 = vector.shape_cast %7 : vector<16x32xf32> to vector<1x16x32xf32>
    tpu.vector_store %arg11[%c0_7, %c0_8, %c0_9], %10 {strides = array<i32>} : memref<4x16x32xf32, #tpu.memory_space<vmem>>, vector<1x16x32xf32>,
    %c1 = arith.constant 1 : index
    %c0_10 = arith.constant 0 : index
    %c0_11 = arith.constant 0 : index
    %11 = vector.load %arg1[%c1, %c0_10, %c0_11] : memref<4x4x32xf32, #tpu.memory_space<vmem>>, vector<1x4x32xf32>
    %12 = vector.shape_cast %11 : vector<1x4x32xf32> to vector<4x32xf32>
    %cst_12 = arith.constant dense<0.000000e+00> : vector<16x32xf32>
    %13 = tpu.matmul %0, %12, %cst_12 {dimension_numbers = #tpu.dot_dimension_numbers<[1], [0], [0], [1], [0, 0, 1, 1], [], []>} : vector<16x4xf32>, vector<4x32xf32>, vector<16x32xf32> -> vector<16x32xf32>
    %c1_13 = arith.constant 1 : index
    %c0_14 = arith.constant 0 : index
    %c0_15 = arith.constant 0 : index
    %14 = vector.load %arg3[%c1_13, %c0_14, %c0_15] : memref<4x1x32xf32, #tpu.memory_space<vmem>>, vector<1x1x32xf32>
    %15 = vector.shape_cast %14 : vector<1x1x32xf32> to vector<1x32xf32>
    %16 = vector.broadcast %15 : vector<1x32xf32> to vector<16x32xf32>
    %17 = arith.addf %13, %16 : vector<16x32xf32>
    %c1_16 = arith.constant 1 : index
    %c0_17 = arith.constant 0 : index
    %c0_18 = arith.constant 0 : index
    %18 = vector.load %arg11[%c1_16, %c0_17, %c0_18] : memref<4x16x32xf32, #tpu.memory_space<vmem>>, vector<1x16x32xf32>
    %19 = vector.shape_cast %18 : vector<1x16x32xf32> to vector<16x32xf32>
    %20 = vector.shape_cast %17 : vector<16x32xf32> to vector<1x16x32xf32>
    tpu.vector_store %arg11[%c1_16, %c0_17, %c0_18], %20 {strides = array<i32>} : memref<4x16x32xf32, #tpu.memory_space<vmem>>, vector<1x16x32xf32>,
    %c2 = arith.constant 2 : index
    %c0_19 = arith.constant 0 : index
    %c0_20 = arith.constant 0 : index
    %21 = vector.load %arg1[%c2, %c0_19, %c0_20] : memref<4x4x32xf32, #tpu.memory_space<vmem>>, vector<1x4x32xf32>
    %22 = vector.shape_cast %21 : vector<1x4x32xf32> to vector<4x32xf32>
    %cst_21 = arith.constant dense<0.000000e+00> : vector<16x32xf32>
    %23 = tpu.matmul %0, %22, %cst_21 {dimension_numbers = #tpu.dot_dimension_numbers<[1], [0], [0], [1], [0, 0, 1, 1], [], []>} : vector<16x4xf32>, vector<4x32xf32>, vector<16x32xf32> -> vector<16x32xf32>
    %c2_22 = arith.constant 2 : index
    %c0_23 = arith.constant 0 : index
    %c0_24 = arith.constant 0 : index
    %24 = vector.load %arg3[%c2_22, %c0_23, %c0_24] : memref<4x1x32xf32, #tpu.memory_space<vmem>>, vector<1x1x32xf32>
    %25 = vector.shape_cast %24 : vector<1x1x32xf32> to vector<1x32xf32>
    %26 = vector.broadcast %25 : vector<1x32xf32> to vector<16x32xf32>
    %27 = arith.addf %23, %26 : vector<16x32xf32>
    %c2_25 = arith.constant 2 : index
    %c0_26 = arith.constant 0 : index
    %c0_27 = arith.constant 0 : index
    %28 = vector.load %arg11[%c2_25, %c0_26, %c0_27] : memref<4x16x32xf32, #tpu.memory_space<vmem>>, vector<1x16x32xf32>
    %29 = vector.shape_cast %28 : vector<1x16x32xf32> to vector<16x32xf32>
    %30 = vector.shape_cast %27 : vector<16x32xf32> to vector<1x16x32xf32>
    tpu.vector_store %arg11[%c2_25, %c0_26, %c0_27], %30 {strides = array<i32>} : memref<4x16x32xf32, #tpu.memory_space<vmem>>, vector<1x16x32xf32>,
    %c3 = arith.constant 3 : index
    %c0_28 = arith.constant 0 : index
    %c0_29 = arith.constant 0 : index
    %31 = vector.load %arg1[%c3, %c0_28, %c0_29] : memref<4x4x32xf32, #tpu.memory_space<vmem>>, vector<1x4x32xf32>
    %32 = vector.shape_cast %31 : vector<1x4x32xf32> to vector<4x32xf32>
    %cst_30 = arith.constant dense<0.000000e+00> : vector<16x32xf32>
    %33 = tpu.matmul %0, %32, %cst_30 {dimension_numbers = #tpu.dot_dimension_numbers<[1], [0], [0], [1], [0, 0, 1, 1], [], []>} : vector<16x4xf32>, vector<4x32xf32>, vector<16x32xf32> -> vector<16x32xf32>
    %c3_31 = arith.constant 3 : index
    %c0_32 = arith.constant 0 : index
    %c0_33 = arith.constant 0 : index
    %34 = vector.load %arg3[%c3_31, %c0_32, %c0_33] : memref<4x1x32xf32, #tpu.memory_space<vmem>>, vector<1x1x32xf32>
    %35 = vector.shape_cast %34 : vector<1x1x32xf32> to vector<1x32xf32>
    %36 = vector.broadcast %35 : vector<1x32xf32> to vector<16x32xf32>
    %37 = arith.addf %33, %36 : vector<16x32xf32>
    %c3_34 = arith.constant 3 : index
    %c0_35 = arith.constant 0 : index
    %c0_36 = arith.constant 0 : index
    %38 = vector.load %arg11[%c3_34, %c0_35, %c0_36] : memref<4x16x32xf32, #tpu.memory_space<vmem>>, vector<1x16x32xf32>
    %39 = vector.shape_cast %38 : vector<1x16x32xf32> to vector<16x32xf32>
    %40 = vector.shape_cast %37 : vector<16x32xf32> to vector<1x16x32xf32>
    tpu.vector_store %arg11[%c3_34, %c0_35, %c0_36], %40 {strides = array<i32>} : memref<4x16x32xf32, #tpu.memory_space<vmem>>, vector<1x16x32xf32>,
    %c0_37 = arith.constant 0 : index
    %c0_38 = arith.constant 0 : index
    %c0_39 = arith.constant 0 : index
    %41 = vector.load %arg2[%c0_37, %c0_38, %c0_39] : memref<4x32x32xf32, #tpu.memory_space<vmem>>, vector<1x32x32xf32>
    %42 = vector.shape_cast %41 : vector<1x32x32xf32> to vector<32x32xf32>
    %c1_40 = arith.constant 1 : index
    %c0_41 = arith.constant 0 : index
    %c0_42 = arith.constant 0 : index
    %43 = vector.load %arg2[%c1_40, %c0_41, %c0_42] : memref<4x32x32xf32, #tpu.memory_space<vmem>>, vector<1x32x32xf32>
    %44 = vector.shape_cast %43 : vector<1x32x32xf32> to vector<32x32xf32>
    %c2_43 = arith.constant 2 : index
    %c0_44 = arith.constant 0 : index
    %c0_45 = arith.constant 0 : index
    %45 = vector.load %arg2[%c2_43, %c0_44, %c0_45] : memref<4x32x32xf32, #tpu.memory_space<vmem>>, vector<1x32x32xf32>
    %46 = vector.shape_cast %45 : vector<1x32x32xf32> to vector<32x32xf32>
    %c3_46 = arith.constant 3 : index
    %c0_47 = arith.constant 0 : index
    %c0_48 = arith.constant 0 : index
    %47 = vector.load %arg2[%c3_46, %c0_47, %c0_48] : memref<4x32x32xf32, #tpu.memory_space<vmem>>, vector<1x32x32xf32>
    %48 = vector.shape_cast %47 : vector<1x32x32xf32> to vector<32x32xf32>
    %c0_49 = arith.constant 0 : index
    %c0_50 = arith.constant 0 : index
    %49 = vector.load %arg4[%c0_49, %c0_50] : memref<2x32xf32, #tpu.memory_space<vmem>>, vector<2x32xf32>
    %c0_51 = arith.constant 0 : index
    %c0_52 = arith.constant 0 : index
    %50 = vector.load %arg5[%c0_51, %c0_52] : memref<2x32xf32, #tpu.memory_space<vmem>>, vector<2x32xf32>
    %c0_i32 = arith.constant 0 : i32
    %c2_i32 = arith.constant 2 : i32
    %51 = arith.muli %c0_i32, %c2_i32 : i32
    %c0_53 = arith.constant 0 : index
    %52 = arith.index_cast %51 : i32 to index
    %c0_54 = arith.constant 0 : index
    %53 = vector.load %arg11[%c0_53, %52, %c0_54] : memref<4x16x32xf32, #tpu.memory_space<vmem>>, vector<1x2x32xf32>
    %54 = vector.shape_cast %53 : vector<1x2x32xf32> to vector<2x32xf32>
    %cst_55 = arith.constant dense<0.000000e+00> : vector<2x32xf32>
    %55 = tpu.matmul %49, %42, %cst_55 {dimension_numbers = #tpu.dot_dimension_numbers<[1], [0], [0], [1], [0, 0, 1, 1], [], []>} : vector<2x32xf32>, vector<32x32xf32>, vector<2x32xf32> -> vector<2x32xf32>
    %56 = arith.addf %54, %55 : vector<2x32xf32>
    %57 = arith.negf %56 : vector<2x32xf32>
    %58 = math.exp %57 : vector<2x32xf32>
    %cst_56 = arith.constant 1.000000e+00 : f32
    %59 = vector.broadcast %cst_56 : f32 to vector<2x32xf32>
    %60 = arith.addf %59, %58 : vector<2x32xf32>
    %61 = arith.divf %59, %60 : vector<2x32xf32>
    %c1_57 = arith.constant 1 : index
    %62 = arith.index_cast %51 : i32 to index
    %c0_58 = arith.constant 0 : index
    %63 = vector.load %arg11[%c1_57, %62, %c0_58] : memref<4x16x32xf32, #tpu.memory_space<vmem>>, vector<1x2x32xf32>
    %64 = vector.shape_cast %63 : vector<1x2x32xf32> to vector<2x32xf32>
    %cst_59 = arith.constant dense<0.000000e+00> : vector<2x32xf32>
    %65 = tpu.matmul %49, %44, %cst_59 {dimension_numbers = #tpu.dot_dimension_numbers<[1], [0], [0], [1], [0, 0, 1, 1], [], []>} : vector<2x32xf32>, vector<32x32xf32>, vector<2x32xf32> -> vector<2x32xf32>
    %66 = arith.addf %64, %65 : vector<2x32xf32>
    %67 = arith.negf %66 : vector<2x32xf32>
    %68 = math.exp %67 : vector<2x32xf32>
    %cst_60 = arith.constant 1.000000e+00 : f32
    %69 = vector.broadcast %cst_60 : f32 to vector<2x32xf32>
    %70 = arith.addf %69, %68 : vector<2x32xf32>
    %71 = arith.divf %69, %70 : vector<2x32xf32>
    %c2_61 = arith.constant 2 : index
    %72 = arith.index_cast %51 : i32 to index
    %c0_62 = arith.constant 0 : index
    %73 = vector.load %arg11[%c2_61, %72, %c0_62] : memref<4x16x32xf32, #tpu.memory_space<vmem>>, vector<1x2x32xf32>
    %74 = vector.shape_cast %73 : vector<1x2x32xf32> to vector<2x32xf32>
    %cst_63 = arith.constant dense<0.000000e+00> : vector<2x32xf32>
    %75 = tpu.matmul %49, %46, %cst_63 {dimension_numbers = #tpu.dot_dimension_numbers<[1], [0], [0], [1], [0, 0, 1, 1], [], []>} : vector<2x32xf32>, vector<32x32xf32>, vector<2x32xf32> -> vector<2x32xf32>
    %76 = arith.addf %74, %75 : vector<2x32xf32>
    %77 = math.tanh %76 : vector<2x32xf32>
    %c3_64 = arith.constant 3 : index
    %78 = arith.index_cast %51 : i32 to index
    %c0_65 = arith.constant 0 : index
    %79 = vector.load %arg11[%c3_64, %78, %c0_65] : memref<4x16x32xf32, #tpu.memory_space<vmem>>, vector<1x2x32xf32>
    %80 = vector.shape_cast %79 : vector<1x2x32xf32> to vector<2x32xf32>
    %cst_66 = arith.constant dense<0.000000e+00> : vector<2x32xf32>
    %81 = tpu.matmul %49, %48, %cst_66 {dimension_numbers = #tpu.dot_dimension_numbers<[1], [0], [0], [1], [0, 0, 1, 1], [], []>} : vector<2x32xf32>, vector<32x32xf32>, vector<2x32xf32> -> vector<2x32xf32>
    %82 = arith.addf %80, %81 : vector<2x32xf32>
    %83 = arith.negf %82 : vector<2x32xf32>
    %84 = math.exp %83 : vector<2x32xf32>
    %cst_67 = arith.constant 1.000000e+00 : f32
    %85 = vector.broadcast %cst_67 : f32 to vector<2x32xf32>
    %86 = arith.addf %85, %84 : vector<2x32xf32>
    %87 = arith.divf %85, %86 : vector<2x32xf32>
    %88 = arith.mulf %71, %50 : vector<2x32xf32>
    %89 = arith.mulf %61, %77 : vector<2x32xf32>
    %90 = arith.addf %88, %89 : vector<2x32xf32>
    %91 = math.tanh %90 : vector<2x32xf32>
    %92 = arith.mulf %87, %91 : vector<2x32xf32>
    %93 = vector.extract_strided_slice %92 {offsets = [1, 0], sizes = [1, 32], strides = [1, 1]} : vector<2x32xf32> to vector<1x32xf32>
    %94 = arith.index_cast %c0_i32 : i32 to index
    %c0_68 = arith.constant 0 : index
    %95 = vector.load %arg12[%94, %c0_68] : memref<8x32xf32, #tpu.memory_space<vmem>>, vector<1x32xf32>
    tpu.vector_store %arg12[%94, %c0_68], %93 {strides = array<i32>} : memref<8x32xf32, #tpu.memory_space<vmem>>, vector<1x32xf32>,
    %c1_i32 = arith.constant 1 : i32
    %c2_i32_69 = arith.constant 2 : i32
    %96 = arith.muli %c1_i32, %c2_i32_69 : i32
    %c0_70 = arith.constant 0 : index
    %97 = arith.index_cast %96 : i32 to index
    %c0_71 = arith.constant 0 : index
    %98 = vector.load %arg11[%c0_70, %97, %c0_71] : memref<4x16x32xf32, #tpu.memory_space<vmem>>, vector<1x2x32xf32>
    %99 = vector.shape_cast %98 : vector<1x2x32xf32> to vector<2x32xf32>
    %cst_72 = arith.constant dense<0.000000e+00> : vector<2x32xf32>
    %100 = tpu.matmul %92, %42, %cst_72 {dimension_numbers = #tpu.dot_dimension_numbers<[1], [0], [0], [1], [0, 0, 1, 1], [], []>} : vector<2x32xf32>, vector<32x32xf32>, vector<2x32xf32> -> vector<2x32xf32>
    %101 = arith.addf %99, %100 : vector<2x32xf32>
    %102 = arith.negf %101 : vector<2x32xf32>
    %103 = math.exp %102 : vector<2x32xf32>
    %cst_73 = arith.constant 1.000000e+00 : f32
    %104 = vector.broadcast %cst_73 : f32 to vector<2x32xf32>
    %105 = arith.addf %104, %103 : vector<2x32xf32>
    %106 = arith.divf %104, %105 : vector<2x32xf32>
    %c1_74 = arith.constant 1 : index
    %107 = arith.index_cast %96 : i32 to index
    %c0_75 = arith.constant 0 : index
    %108 = vector.load %arg11[%c1_74, %107, %c0_75] : memref<4x16x32xf32, #tpu.memory_space<vmem>>, vector<1x2x32xf32>
    %109 = vector.shape_cast %108 : vector<1x2x32xf32> to vector<2x32xf32>
    %cst_76 = arith.constant dense<0.000000e+00> : vector<2x32xf32>
    %110 = tpu.matmul %92, %44, %cst_76 {dimension_numbers = #tpu.dot_dimension_numbers<[1], [0], [0], [1], [0, 0, 1, 1], [], []>} : vector<2x32xf32>, vector<32x32xf32>, vector<2x32xf32> -> vector<2x32xf32>
    %111 = arith.addf %109, %110 : vector<2x32xf32>
    %112 = arith.negf %111 : vector<2x32xf32>
    %113 = math.exp %112 : vector<2x32xf32>
    %cst_77 = arith.constant 1.000000e+00 : f32
    %114 = vector.broadcast %cst_77 : f32 to vector<2x32xf32>
    %115 = arith.addf %114, %113 : vector<2x32xf32>
    %116 = arith.divf %114, %115 : vector<2x32xf32>
    %c2_78 = arith.constant 2 : index
    %117 = arith.index_cast %96 : i32 to index
    %c0_79 = arith.constant 0 : index
    %118 = vector.load %arg11[%c2_78, %117, %c0_79] : memref<4x16x32xf32, #tpu.memory_space<vmem>>, vector<1x2x32xf32>
    %119 = vector.shape_cast %118 : vector<1x2x32xf32> to vector<2x32xf32>
    %cst_80 = arith.constant dense<0.000000e+00> : vector<2x32xf32>
    %120 = tpu.matmul %92, %46, %cst_80 {dimension_numbers = #tpu.dot_dimension_numbers<[1], [0], [0], [1], [0, 0, 1, 1], [], []>} : vector<2x32xf32>, vector<32x32xf32>, vector<2x32xf32> -> vector<2x32xf32>
    %121 = arith.addf %119, %120 : vector<2x32xf32>
    %122 = math.tanh %121 : vector<2x32xf32>
    %c3_81 = arith.constant 3 : index
    %123 = arith.index_cast %96 : i32 to index
    %c0_82 = arith.constant 0 : index
    %124 = vector.load %arg11[%c3_81, %123, %c0_82] : memref<4x16x32xf32, #tpu.memory_space<vmem>>, vector<1x2x32xf32>
    %125 = vector.shape_cast %124 : vector<1x2x32xf32> to vector<2x32xf32>
    %cst_83 = arith.constant dense<0.000000e+00> : vector<2x32xf32>
    %126 = tpu.matmul %92, %48, %cst_83 {dimension_numbers = #tpu.dot_dimension_numbers<[1], [0], [0], [1], [0, 0, 1, 1], [], []>} : vector<2x32xf32>, vector<32x32xf32>, vector<2x32xf32> -> vector<2x32xf32>
    %127 = arith.addf %125, %126 : vector<2x32xf32>
    %128 = arith.negf %127 : vector<2x32xf32>
    %129 = math.exp %128 : vector<2x32xf32>
    %cst_84 = arith.constant 1.000000e+00 : f32
    %130 = vector.broadcast %cst_84 : f32 to vector<2x32xf32>
    %131 = arith.addf %130, %129 : vector<2x32xf32>
    %132 = arith.divf %130, %131 : vector<2x32xf32>
    %133 = arith.mulf %116, %90 : vector<2x32xf32>
    %134 = arith.mulf %106, %122 : vector<2x32xf32>
    %135 = arith.addf %133, %134 : vector<2x32xf32>
    %136 = math.tanh %135 : vector<2x32xf32>
    %137 = arith.mulf %132, %136 : vector<2x32xf32>
    %138 = vector.extract_strided_slice %137 {offsets = [1, 0], sizes = [1, 32], strides = [1, 1]} : vector<2x32xf32> to vector<1x32xf32>
    %139 = arith.index_cast %c1_i32 : i32 to index
    %c0_85 = arith.constant 0 : index
    %140 = vector.load %arg12[%139, %c0_85] : memref<8x32xf32, #tpu.memory_space<vmem>>, vector<1x32xf32>
    tpu.vector_store %arg12[%139, %c0_85], %138 {strides = array<i32>} : memref<8x32xf32, #tpu.memory_space<vmem>>, vector<1x32xf32>,
    %c2_i32_86 = arith.constant 2 : i32
    %c2_i32_87 = arith.constant 2 : i32
    %141 = arith.muli %c2_i32_86, %c2_i32_87 : i32
    %c0_88 = arith.constant 0 : index
    %142 = arith.index_cast %141 : i32 to index
    %c0_89 = arith.constant 0 : index
    %143 = vector.load %arg11[%c0_88, %142, %c0_89] : memref<4x16x32xf32, #tpu.memory_space<vmem>>, vector<1x2x32xf32>
    %144 = vector.shape_cast %143 : vector<1x2x32xf32> to vector<2x32xf32>
    %cst_90 = arith.constant dense<0.000000e+00> : vector<2x32xf32>
    %145 = tpu.matmul %137, %42, %cst_90 {dimension_numbers = #tpu.dot_dimension_numbers<[1], [0], [0], [1], [0, 0, 1, 1], [], []>} : vector<2x32xf32>, vector<32x32xf32>, vector<2x32xf32> -> vector<2x32xf32>
    %146 = arith.addf %144, %145 : vector<2x32xf32>
    %147 = arith.negf %146 : vector<2x32xf32>
    %148 = math.exp %147 : vector<2x32xf32>
    %cst_91 = arith.constant 1.000000e+00 : f32
    %149 = vector.broadcast %cst_91 : f32 to vector<2x32xf32>
    %150 = arith.addf %149, %148 : vector<2x32xf32>
    %151 = arith.divf %149, %150 : vector<2x32xf32>
    %c1_92 = arith.constant 1 : index
    %152 = arith.index_cast %141 : i32 to index
    %c0_93 = arith.constant 0 : index
    %153 = vector.load %arg11[%c1_92, %152, %c0_93] : memref<4x16x32xf32, #tpu.memory_space<vmem>>, vector<1x2x32xf32>
    %154 = vector.shape_cast %153 : vector<1x2x32xf32> to vector<2x32xf32>
    %cst_94 = arith.constant dense<0.000000e+00> : vector<2x32xf32>
    %155 = tpu.matmul %137, %44, %cst_94 {dimension_numbers = #tpu.dot_dimension_numbers<[1], [0], [0], [1], [0, 0, 1, 1], [], []>} : vector<2x32xf32>, vector<32x32xf32>, vector<2x32xf32> -> vector<2x32xf32>
    %156 = arith.addf %154, %155 : vector<2x32xf32>
    %157 = arith.negf %156 : vector<2x32xf32>
    %158 = math.exp %157 : vector<2x32xf32>
    %cst_95 = arith.constant 1.000000e+00 : f32
    %159 = vector.broadcast %cst_95 : f32 to vector<2x32xf32>
    %160 = arith.addf %159, %158 : vector<2x32xf32>
    %161 = arith.divf %159, %160 : vector<2x32xf32>
    %c2_96 = arith.constant 2 : index
    %162 = arith.index_cast %141 : i32 to index
    %c0_97 = arith.constant 0 : index
    %163 = vector.load %arg11[%c2_96, %162, %c0_97] : memref<4x16x32xf32, #tpu.memory_space<vmem>>, vector<1x2x32xf32>
    %164 = vector.shape_cast %163 : vector<1x2x32xf32> to vector<2x32xf32>
    %cst_98 = arith.constant dense<0.000000e+00> : vector<2x32xf32>
    %165 = tpu.matmul %137, %46, %cst_98 {dimension_numbers = #tpu.dot_dimension_numbers<[1], [0], [0], [1], [0, 0, 1, 1], [], []>} : vector<2x32xf32>, vector<32x32xf32>, vector<2x32xf32> -> vector<2x32xf32>
    %166 = arith.addf %164, %165 : vector<2x32xf32>
    %167 = math.tanh %166 : vector<2x32xf32>
    %c3_99 = arith.constant 3 : index
    %168 = arith.index_cast %141 : i32 to index
    %c0_100 = arith.constant 0 : index
    %169 = vector.load %arg11[%c3_99, %168, %c0_100] : memref<4x16x32xf32, #tpu.memory_space<vmem>>, vector<1x2x32xf32>
    %170 = vector.shape_cast %169 : vector<1x2x32xf32> to vector<2x32xf32>
    %cst_101 = arith.constant dense<0.000000e+00> : vector<2x32xf32>
    %171 = tpu.matmul %137, %48, %cst_101 {dimension_numbers = #tpu.dot_dimension_numbers<[1], [0], [0], [1], [0, 0, 1, 1], [], []>} : vector<2x32xf32>, vector<32x32xf32>, vector<2x32xf32> -> vector<2x32xf32>
    %172 = arith.addf %170, %171 : vector<2x32xf32>
    %173 = arith.negf %172 : vector<2x32xf32>
    %174 = math.exp %173 : vector<2x32xf32>
    %cst_102 = arith.constant 1.000000e+00 : f32
    %175 = vector.broadcast %cst_102 : f32 to vector<2x32xf32>
    %176 = arith.addf %175, %174 : vector<2x32xf32>
    %177 = arith.divf %175, %176 : vector<2x32xf32>
    %178 = arith.mulf %161, %135 : vector<2x32xf32>
    %179 = arith.mulf %151, %167 : vector<2x32xf32>
    %180 = arith.addf %178, %179 : vector<2x32xf32>
    %181 = math.tanh %180 : vector<2x32xf32>
    %182 = arith.mulf %177, %181 : vector<2x32xf32>
    %183 = vector.extract_strided_slice %182 {offsets = [1, 0], sizes = [1, 32], strides = [1, 1]} : vector<2x32xf32> to vector<1x32xf32>
    %184 = arith.index_cast %c2_i32_86 : i32 to index
    %c0_103 = arith.constant 0 : index
    %185 = vector.load %arg12[%184, %c0_103] : memref<8x32xf32, #tpu.memory_space<vmem>>, vector<1x32xf32>
    tpu.vector_store %arg12[%184, %c0_103], %183 {strides = array<i32>} : memref<8x32xf32, #tpu.memory_space<vmem>>, vector<1x32xf32>,
    %c3_i32 = arith.constant 3 : i32
    %c2_i32_104 = arith.constant 2 : i32
    %186 = arith.muli %c3_i32, %c2_i32_104 : i32
    %c0_105 = arith.constant 0 : index
    %187 = arith.index_cast %186 : i32 to index
    %c0_106 = arith.constant 0 : index
    %188 = vector.load %arg11[%c0_105, %187, %c0_106] : memref<4x16x32xf32, #tpu.memory_space<vmem>>, vector<1x2x32xf32>
    %189 = vector.shape_cast %188 : vector<1x2x32xf32> to vector<2x32xf32>
    %cst_107 = arith.constant dense<0.000000e+00> : vector<2x32xf32>
    %190 = tpu.matmul %182, %42, %cst_107 {dimension_numbers = #tpu.dot_dimension_numbers<[1], [0], [0], [1], [0, 0, 1, 1], [], []>} : vector<2x32xf32>, vector<32x32xf32>, vector<2x32xf32> -> vector<2x32xf32>
    %191 = arith.addf %189, %190 : vector<2x32xf32>
    %192 = arith.negf %191 : vector<2x32xf32>
    %193 = math.exp %192 : vector<2x32xf32>
    %cst_108 = arith.constant 1.000000e+00 : f32
    %194 = vector.broadcast %cst_108 : f32 to vector<2x32xf32>
    %195 = arith.addf %194, %193 : vector<2x32xf32>
    %196 = arith.divf %194, %195 : vector<2x32xf32>
    %c1_109 = arith.constant 1 : index
    %197 = arith.index_cast %186 : i32 to index
    %c0_110 = arith.constant 0 : index
    %198 = vector.load %arg11[%c1_109, %197, %c0_110] : memref<4x16x32xf32, #tpu.memory_space<vmem>>, vector<1x2x32xf32>
    %199 = vector.shape_cast %198 : vector<1x2x32xf32> to vector<2x32xf32>
    %cst_111 = arith.constant dense<0.000000e+00> : vector<2x32xf32>
    %200 = tpu.matmul %182, %44, %cst_111 {dimension_numbers = #tpu.dot_dimension_numbers<[1], [0], [0], [1], [0, 0, 1, 1], [], []>} : vector<2x32xf32>, vector<32x32xf32>, vector<2x32xf32> -> vector<2x32xf32>
    %201 = arith.addf %199, %200 : vector<2x32xf32>
    %202 = arith.negf %201 : vector<2x32xf32>
    %203 = math.exp %202 : vector<2x32xf32>
    %cst_112 = arith.constant 1.000000e+00 : f32
    %204 = vector.broadcast %cst_112 : f32 to vector<2x32xf32>
    %205 = arith.addf %204, %203 : vector<2x32xf32>
    %206 = arith.divf %204, %205 : vector<2x32xf32>
    %c2_113 = arith.constant 2 : index
    %207 = arith.index_cast %186 : i32 to index
    %c0_114 = arith.constant 0 : index
    %208 = vector.load %arg11[%c2_113, %207, %c0_114] : memref<4x16x32xf32, #tpu.memory_space<vmem>>, vector<1x2x32xf32>
    %209 = vector.shape_cast %208 : vector<1x2x32xf32> to vector<2x32xf32>
    %cst_115 = arith.constant dense<0.000000e+00> : vector<2x32xf32>
    %210 = tpu.matmul %182, %46, %cst_115 {dimension_numbers = #tpu.dot_dimension_numbers<[1], [0], [0], [1], [0, 0, 1, 1], [], []>} : vector<2x32xf32>, vector<32x32xf32>, vector<2x32xf32> -> vector<2x32xf32>
    %211 = arith.addf %209, %210 : vector<2x32xf32>
    %212 = math.tanh %211 : vector<2x32xf32>
    %c3_116 = arith.constant 3 : index
    %213 = arith.index_cast %186 : i32 to index
    %c0_117 = arith.constant 0 : index
    %214 = vector.load %arg11[%c3_116, %213, %c0_117] : memref<4x16x32xf32, #tpu.memory_space<vmem>>, vector<1x2x32xf32>
    %215 = vector.shape_cast %214 : vector<1x2x32xf32> to vector<2x32xf32>
    %cst_118 = arith.constant dense<0.000000e+00> : vector<2x32xf32>
    %216 = tpu.matmul %182, %48, %cst_118 {dimension_numbers = #tpu.dot_dimension_numbers<[1], [0], [0], [1], [0, 0, 1, 1], [], []>} : vector<2x32xf32>, vector<32x32xf32>, vector<2x32xf32> -> vector<2x32xf32>
    %217 = arith.addf %215, %216 : vector<2x32xf32>
    %218 = arith.negf %217 : vector<2x32xf32>
    %219 = math.exp %218 : vector<2x32xf32>
    %cst_119 = arith.constant 1.000000e+00 : f32
    %220 = vector.broadcast %cst_119 : f32 to vector<2x32xf32>
    %221 = arith.addf %220, %219 : vector<2x32xf32>
    %222 = arith.divf %220, %221 : vector<2x32xf32>
    %223 = arith.mulf %206, %180 : vector<2x32xf32>
    %224 = arith.mulf %196, %212 : vector<2x32xf32>
    %225 = arith.addf %223, %224 : vector<2x32xf32>
    %226 = math.tanh %225 : vector<2x32xf32>
    %227 = arith.mulf %222, %226 : vector<2x32xf32>
    %228 = vector.extract_strided_slice %227 {offsets = [1, 0], sizes = [1, 32], strides = [1, 1]} : vector<2x32xf32> to vector<1x32xf32>
    %229 = arith.index_cast %c3_i32 : i32 to index
    %c0_120 = arith.constant 0 : index
    %230 = vector.load %arg12[%229, %c0_120] : memref<8x32xf32, #tpu.memory_space<vmem>>, vector<1x32xf32>
    tpu.vector_store %arg12[%229, %c0_120], %228 {strides = array<i32>} : memref<8x32xf32, #tpu.memory_space<vmem>>, vector<1x32xf32>,
    %c4_i32 = arith.constant 4 : i32
    %c2_i32_121 = arith.constant 2 : i32
    %231 = arith.muli %c4_i32, %c2_i32_121 : i32
    %c0_122 = arith.constant 0 : index
    %232 = arith.index_cast %231 : i32 to index
    %c0_123 = arith.constant 0 : index
    %233 = vector.load %arg11[%c0_122, %232, %c0_123] : memref<4x16x32xf32, #tpu.memory_space<vmem>>, vector<1x2x32xf32>
    %234 = vector.shape_cast %233 : vector<1x2x32xf32> to vector<2x32xf32>
    %cst_124 = arith.constant dense<0.000000e+00> : vector<2x32xf32>
    %235 = tpu.matmul %227, %42, %cst_124 {dimension_numbers = #tpu.dot_dimension_numbers<[1], [0], [0], [1], [0, 0, 1, 1], [], []>} : vector<2x32xf32>, vector<32x32xf32>, vector<2x32xf32> -> vector<2x32xf32>
    %236 = arith.addf %234, %235 : vector<2x32xf32>
    %237 = arith.negf %236 : vector<2x32xf32>
    %238 = math.exp %237 : vector<2x32xf32>
    %cst_125 = arith.constant 1.000000e+00 : f32
    %239 = vector.broadcast %cst_125 : f32 to vector<2x32xf32>
    %240 = arith.addf %239, %238 : vector<2x32xf32>
    %241 = arith.divf %239, %240 : vector<2x32xf32>
    %c1_126 = arith.constant 1 : index
    %242 = arith.index_cast %231 : i32 to index
    %c0_127 = arith.constant 0 : index
    %243 = vector.load %arg11[%c1_126, %242, %c0_127] : memref<4x16x32xf32, #tpu.memory_space<vmem>>, vector<1x2x32xf32>
    %244 = vector.shape_cast %243 : vector<1x2x32xf32> to vector<2x32xf32>
    %cst_128 = arith.constant dense<0.000000e+00> : vector<2x32xf32>
    %245 = tpu.matmul %227, %44, %cst_128 {dimension_numbers = #tpu.dot_dimension_numbers<[1], [0], [0], [1], [0, 0, 1, 1], [], []>} : vector<2x32xf32>, vector<32x32xf32>, vector<2x32xf32> -> vector<2x32xf32>
    %246 = arith.addf %244, %245 : vector<2x32xf32>
    %247 = arith.negf %246 : vector<2x32xf32>
    %248 = math.exp %247 : vector<2x32xf32>
    %cst_129 = arith.constant 1.000000e+00 : f32
    %249 = vector.broadcast %cst_129 : f32 to vector<2x32xf32>
    %250 = arith.addf %249, %248 : vector<2x32xf32>
    %251 = arith.divf %249, %250 : vector<2x32xf32>
    %c2_130 = arith.constant 2 : index
    %252 = arith.index_cast %231 : i32 to index
    %c0_131 = arith.constant 0 : index
    %253 = vector.load %arg11[%c2_130, %252, %c0_131] : memref<4x16x32xf32, #tpu.memory_space<vmem>>, vector<1x2x32xf32>
    %254 = vector.shape_cast %253 : vector<1x2x32xf32> to vector<2x32xf32>
    %cst_132 = arith.constant dense<0.000000e+00> : vector<2x32xf32>
    %255 = tpu.matmul %227, %46, %cst_132 {dimension_numbers = #tpu.dot_dimension_numbers<[1], [0], [0], [1], [0, 0, 1, 1], [], []>} : vector<2x32xf32>, vector<32x32xf32>, vector<2x32xf32> -> vector<2x32xf32>
    %256 = arith.addf %254, %255 : vector<2x32xf32>
    %257 = math.tanh %256 : vector<2x32xf32>
    %c3_133 = arith.constant 3 : index
    %258 = arith.index_cast %231 : i32 to index
    %c0_134 = arith.constant 0 : index
    %259 = vector.load %arg11[%c3_133, %258, %c0_134] : memref<4x16x32xf32, #tpu.memory_space<vmem>>, vector<1x2x32xf32>
    %260 = vector.shape_cast %259 : vector<1x2x32xf32> to vector<2x32xf32>
    %cst_135 = arith.constant dense<0.000000e+00> : vector<2x32xf32>
    %261 = tpu.matmul %227, %48, %cst_135 {dimension_numbers = #tpu.dot_dimension_numbers<[1], [0], [0], [1], [0, 0, 1, 1], [], []>} : vector<2x32xf32>, vector<32x32xf32>, vector<2x32xf32> -> vector<2x32xf32>
    %262 = arith.addf %260, %261 : vector<2x32xf32>
    %263 = arith.negf %262 : vector<2x32xf32>
    %264 = math.exp %263 : vector<2x32xf32>
    %cst_136 = arith.constant 1.000000e+00 : f32
    %265 = vector.broadcast %cst_136 : f32 to vector<2x32xf32>
    %266 = arith.addf %265, %264 : vector<2x32xf32>
    %267 = arith.divf %265, %266 : vector<2x32xf32>
    %268 = arith.mulf %251, %225 : vector<2x32xf32>
    %269 = arith.mulf %241, %257 : vector<2x32xf32>
    %270 = arith.addf %268, %269 : vector<2x32xf32>
    %271 = math.tanh %270 : vector<2x32xf32>
    %272 = arith.mulf %267, %271 : vector<2x32xf32>
    %273 = vector.extract_strided_slice %272 {offsets = [1, 0], sizes = [1, 32], strides = [1, 1]} : vector<2x32xf32> to vector<1x32xf32>
    %274 = arith.index_cast %c4_i32 : i32 to index
    %c0_137 = arith.constant 0 : index
    %275 = vector.load %arg12[%274, %c0_137] : memref<8x32xf32, #tpu.memory_space<vmem>>, vector<1x32xf32>
    tpu.vector_store %arg12[%274, %c0_137], %273 {strides = array<i32>} : memref<8x32xf32, #tpu.memory_space<vmem>>, vector<1x32xf32>,
    %c5_i32 = arith.constant 5 : i32
    %c2_i32_138 = arith.constant 2 : i32
    %276 = arith.muli %c5_i32, %c2_i32_138 : i32
    %c0_139 = arith.constant 0 : index
    %277 = arith.index_cast %276 : i32 to index
    %c0_140 = arith.constant 0 : index
    %278 = vector.load %arg11[%c0_139, %277, %c0_140] : memref<4x16x32xf32, #tpu.memory_space<vmem>>, vector<1x2x32xf32>
    %279 = vector.shape_cast %278 : vector<1x2x32xf32> to vector<2x32xf32>
    %cst_141 = arith.constant dense<0.000000e+00> : vector<2x32xf32>
    %280 = tpu.matmul %272, %42, %cst_141 {dimension_numbers = #tpu.dot_dimension_numbers<[1], [0], [0], [1], [0, 0, 1, 1], [], []>} : vector<2x32xf32>, vector<32x32xf32>, vector<2x32xf32> -> vector<2x32xf32>
    %281 = arith.addf %279, %280 : vector<2x32xf32>
    %282 = arith.negf %281 : vector<2x32xf32>
    %283 = math.exp %282 : vector<2x32xf32>
    %cst_142 = arith.constant 1.000000e+00 : f32
    %284 = vector.broadcast %cst_142 : f32 to vector<2x32xf32>
    %285 = arith.addf %284, %283 : vector<2x32xf32>
    %286 = arith.divf %284, %285 : vector<2x32xf32>
    %c1_143 = arith.constant 1 : index
    %287 = arith.index_cast %276 : i32 to index
    %c0_144 = arith.constant 0 : index
    %288 = vector.load %arg11[%c1_143, %287, %c0_144] : memref<4x16x32xf32, #tpu.memory_space<vmem>>, vector<1x2x32xf32>
    %289 = vector.shape_cast %288 : vector<1x2x32xf32> to vector<2x32xf32>
    %cst_145 = arith.constant dense<0.000000e+00> : vector<2x32xf32>
    %290 = tpu.matmul %272, %44, %cst_145 {dimension_numbers = #tpu.dot_dimension_numbers<[1], [0], [0], [1], [0, 0, 1, 1], [], []>} : vector<2x32xf32>, vector<32x32xf32>, vector<2x32xf32> -> vector<2x32xf32>
    %291 = arith.addf %289, %290 : vector<2x32xf32>
    %292 = arith.negf %291 : vector<2x32xf32>
    %293 = math.exp %292 : vector<2x32xf32>
    %cst_146 = arith.constant 1.000000e+00 : f32
    %294 = vector.broadcast %cst_146 : f32 to vector<2x32xf32>
    %295 = arith.addf %294, %293 : vector<2x32xf32>
    %296 = arith.divf %294, %295 : vector<2x32xf32>
    %c2_147 = arith.constant 2 : index
    %297 = arith.index_cast %276 : i32 to index
    %c0_148 = arith.constant 0 : index
    %298 = vector.load %arg11[%c2_147, %297, %c0_148] : memref<4x16x32xf32, #tpu.memory_space<vmem>>, vector<1x2x32xf32>
    %299 = vector.shape_cast %298 : vector<1x2x32xf32> to vector<2x32xf32>
    %cst_149 = arith.constant dense<0.000000e+00> : vector<2x32xf32>
    %300 = tpu.matmul %272, %46, %cst_149 {dimension_numbers = #tpu.dot_dimension_numbers<[1], [0], [0], [1], [0, 0, 1, 1], [], []>} : vector<2x32xf32>, vector<32x32xf32>, vector<2x32xf32> -> vector<2x32xf32>
    %301 = arith.addf %299, %300 : vector<2x32xf32>
    %302 = math.tanh %301 : vector<2x32xf32>
    %c3_150 = arith.constant 3 : index
    %303 = arith.index_cast %276 : i32 to index
    %c0_151 = arith.constant 0 : index
    %304 = vector.load %arg11[%c3_150, %303, %c0_151] : memref<4x16x32xf32, #tpu.memory_space<vmem>>, vector<1x2x32xf32>
    %305 = vector.shape_cast %304 : vector<1x2x32xf32> to vector<2x32xf32>
    %cst_152 = arith.constant dense<0.000000e+00> : vector<2x32xf32>
    %306 = tpu.matmul %272, %48, %cst_152 {dimension_numbers = #tpu.dot_dimension_numbers<[1], [0], [0], [1], [0, 0, 1, 1], [], []>} : vector<2x32xf32>, vector<32x32xf32>, vector<2x32xf32> -> vector<2x32xf32>
    %307 = arith.addf %305, %306 : vector<2x32xf32>
    %308 = arith.negf %307 : vector<2x32xf32>
    %309 = math.exp %308 : vector<2x32xf32>
    %cst_153 = arith.constant 1.000000e+00 : f32
    %310 = vector.broadcast %cst_153 : f32 to vector<2x32xf32>
    %311 = arith.addf %310, %309 : vector<2x32xf32>
    %312 = arith.divf %310, %311 : vector<2x32xf32>
    %313 = arith.mulf %296, %270 : vector<2x32xf32>
    %314 = arith.mulf %286, %302 : vector<2x32xf32>
    %315 = arith.addf %313, %314 : vector<2x32xf32>
    %316 = math.tanh %315 : vector<2x32xf32>
    %317 = arith.mulf %312, %316 : vector<2x32xf32>
    %318 = vector.extract_strided_slice %317 {offsets = [1, 0], sizes = [1, 32], strides = [1, 1]} : vector<2x32xf32> to vector<1x32xf32>
    %319 = arith.index_cast %c5_i32 : i32 to index
    %c0_154 = arith.constant 0 : index
    %320 = vector.load %arg12[%319, %c0_154] : memref<8x32xf32, #tpu.memory_space<vmem>>, vector<1x32xf32>
    tpu.vector_store %arg12[%319, %c0_154], %318 {strides = array<i32>} : memref<8x32xf32, #tpu.memory_space<vmem>>, vector<1x32xf32>,
    %c6_i32 = arith.constant 6 : i32
    %c2_i32_155 = arith.constant 2 : i32
    %321 = arith.muli %c6_i32, %c2_i32_155 : i32
    %c0_156 = arith.constant 0 : index
    %322 = arith.index_cast %321 : i32 to index
    %c0_157 = arith.constant 0 : index
    %323 = vector.load %arg11[%c0_156, %322, %c0_157] : memref<4x16x32xf32, #tpu.memory_space<vmem>>, vector<1x2x32xf32>
    %324 = vector.shape_cast %323 : vector<1x2x32xf32> to vector<2x32xf32>
    %cst_158 = arith.constant dense<0.000000e+00> : vector<2x32xf32>
    %325 = tpu.matmul %317, %42, %cst_158 {dimension_numbers = #tpu.dot_dimension_numbers<[1], [0], [0], [1], [0, 0, 1, 1], [], []>} : vector<2x32xf32>, vector<32x32xf32>, vector<2x32xf32> -> vector<2x32xf32>
    %326 = arith.addf %324, %325 : vector<2x32xf32>
    %327 = arith.negf %326 : vector<2x32xf32>
    %328 = math.exp %327 : vector<2x32xf32>
    %cst_159 = arith.constant 1.000000e+00 : f32
    %329 = vector.broadcast %cst_159 : f32 to vector<2x32xf32>
    %330 = arith.addf %329, %328 : vector<2x32xf32>
    %331 = arith.divf %329, %330 : vector<2x32xf32>
    %c1_160 = arith.constant 1 : index
    %332 = arith.index_cast %321 : i32 to index
    %c0_161 = arith.constant 0 : index
    %333 = vector.load %arg11[%c1_160, %332, %c0_161] : memref<4x16x32xf32, #tpu.memory_space<vmem>>, vector<1x2x32xf32>
    %334 = vector.shape_cast %333 : vector<1x2x32xf32> to vector<2x32xf32>
    %cst_162 = arith.constant dense<0.000000e+00> : vector<2x32xf32>
    %335 = tpu.matmul %317, %44, %cst_162 {dimension_numbers = #tpu.dot_dimension_numbers<[1], [0], [0], [1], [0, 0, 1, 1], [], []>} : vector<2x32xf32>, vector<32x32xf32>, vector<2x32xf32> -> vector<2x32xf32>
    %336 = arith.addf %334, %335 : vector<2x32xf32>
    %337 = arith.negf %336 : vector<2x32xf32>
    %338 = math.exp %337 : vector<2x32xf32>
    %cst_163 = arith.constant 1.000000e+00 : f32
    %339 = vector.broadcast %cst_163 : f32 to vector<2x32xf32>
    %340 = arith.addf %339, %338 : vector<2x32xf32>
    %341 = arith.divf %339, %340 : vector<2x32xf32>
    %c2_164 = arith.constant 2 : index
    %342 = arith.index_cast %321 : i32 to index
    %c0_165 = arith.constant 0 : index
    %343 = vector.load %arg11[%c2_164, %342, %c0_165] : memref<4x16x32xf32, #tpu.memory_space<vmem>>, vector<1x2x32xf32>
    %344 = vector.shape_cast %343 : vector<1x2x32xf32> to vector<2x32xf32>
    %cst_166 = arith.constant dense<0.000000e+00> : vector<2x32xf32>
    %345 = tpu.matmul %317, %46, %cst_166 {dimension_numbers = #tpu.dot_dimension_numbers<[1], [0], [0], [1], [0, 0, 1, 1], [], []>} : vector<2x32xf32>, vector<32x32xf32>, vector<2x32xf32> -> vector<2x32xf32>
    %346 = arith.addf %344, %345 : vector<2x32xf32>
    %347 = math.tanh %346 : vector<2x32xf32>
    %c3_167 = arith.constant 3 : index
    %348 = arith.index_cast %321 : i32 to index
    %c0_168 = arith.constant 0 : index
    %349 = vector.load %arg11[%c3_167, %348, %c0_168] : memref<4x16x32xf32, #tpu.memory_space<vmem>>, vector<1x2x32xf32>
    %350 = vector.shape_cast %349 : vector<1x2x32xf32> to vector<2x32xf32>
    %cst_169 = arith.constant dense<0.000000e+00> : vector<2x32xf32>
    %351 = tpu.matmul %317, %48, %cst_169 {dimension_numbers = #tpu.dot_dimension_numbers<[1], [0], [0], [1], [0, 0, 1, 1], [], []>} : vector<2x32xf32>, vector<32x32xf32>, vector<2x32xf32> -> vector<2x32xf32>
    %352 = arith.addf %350, %351 : vector<2x32xf32>
    %353 = arith.negf %352 : vector<2x32xf32>
    %354 = math.exp %353 : vector<2x32xf32>
    %cst_170 = arith.constant 1.000000e+00 : f32
    %355 = vector.broadcast %cst_170 : f32 to vector<2x32xf32>
    %356 = arith.addf %355, %354 : vector<2x32xf32>
    %357 = arith.divf %355, %356 : vector<2x32xf32>
    %358 = arith.mulf %341, %315 : vector<2x32xf32>
    %359 = arith.mulf %331, %347 : vector<2x32xf32>
    %360 = arith.addf %358, %359 : vector<2x32xf32>
    %361 = math.tanh %360 : vector<2x32xf32>
    %362 = arith.mulf %357, %361 : vector<2x32xf32>
    %363 = vector.extract_strided_slice %362 {offsets = [1, 0], sizes = [1, 32], strides = [1, 1]} : vector<2x32xf32> to vector<1x32xf32>
    %364 = arith.index_cast %c6_i32 : i32 to index
    %c0_171 = arith.constant 0 : index
    %365 = vector.load %arg12[%364, %c0_171] : memref<8x32xf32, #tpu.memory_space<vmem>>, vector<1x32xf32>
    tpu.vector_store %arg12[%364, %c0_171], %363 {strides = array<i32>} : memref<8x32xf32, #tpu.memory_space<vmem>>, vector<1x32xf32>,
    %c7_i32 = arith.constant 7 : i32
    %c2_i32_172 = arith.constant 2 : i32
    %366 = arith.muli %c7_i32, %c2_i32_172 : i32
    %c0_173 = arith.constant 0 : index
    %367 = arith.index_cast %366 : i32 to index
    %c0_174 = arith.constant 0 : index
    %368 = vector.load %arg11[%c0_173, %367, %c0_174] : memref<4x16x32xf32, #tpu.memory_space<vmem>>, vector<1x2x32xf32>
    %369 = vector.shape_cast %368 : vector<1x2x32xf32> to vector<2x32xf32>
    %cst_175 = arith.constant dense<0.000000e+00> : vector<2x32xf32>
    %370 = tpu.matmul %362, %42, %cst_175 {dimension_numbers = #tpu.dot_dimension_numbers<[1], [0], [0], [1], [0, 0, 1, 1], [], []>} : vector<2x32xf32>, vector<32x32xf32>, vector<2x32xf32> -> vector<2x32xf32>
    %371 = arith.addf %369, %370 : vector<2x32xf32>
    %372 = arith.negf %371 : vector<2x32xf32>
    %373 = math.exp %372 : vector<2x32xf32>
    %cst_176 = arith.constant 1.000000e+00 : f32
    %374 = vector.broadcast %cst_176 : f32 to vector<2x32xf32>
    %375 = arith.addf %374, %373 : vector<2x32xf32>
    %376 = arith.divf %374, %375 : vector<2x32xf32>
    %c1_177 = arith.constant 1 : index
    %377 = arith.index_cast %366 : i32 to index
    %c0_178 = arith.constant 0 : index
    %378 = vector.load %arg11[%c1_177, %377, %c0_178] : memref<4x16x32xf32, #tpu.memory_space<vmem>>, vector<1x2x32xf32>
    %379 = vector.shape_cast %378 : vector<1x2x32xf32> to vector<2x32xf32>
    %cst_179 = arith.constant dense<0.000000e+00> : vector<2x32xf32>
    %380 = tpu.matmul %362, %44, %cst_179 {dimension_numbers = #tpu.dot_dimension_numbers<[1], [0], [0], [1], [0, 0, 1, 1], [], []>} : vector<2x32xf32>, vector<32x32xf32>, vector<2x32xf32> -> vector<2x32xf32>
    %381 = arith.addf %379, %380 : vector<2x32xf32>
    %382 = arith.negf %381 : vector<2x32xf32>
    %383 = math.exp %382 : vector<2x32xf32>
    %cst_180 = arith.constant 1.000000e+00 : f32
    %384 = vector.broadcast %cst_180 : f32 to vector<2x32xf32>
    %385 = arith.addf %384, %383 : vector<2x32xf32>
    %386 = arith.divf %384, %385 : vector<2x32xf32>
    %c2_181 = arith.constant 2 : index
    %387 = arith.index_cast %366 : i32 to index
    %c0_182 = arith.constant 0 : index
    %388 = vector.load %arg11[%c2_181, %387, %c0_182] : memref<4x16x32xf32, #tpu.memory_space<vmem>>, vector<1x2x32xf32>
    %389 = vector.shape_cast %388 : vector<1x2x32xf32> to vector<2x32xf32>
    %cst_183 = arith.constant dense<0.000000e+00> : vector<2x32xf32>
    %390 = tpu.matmul %362, %46, %cst_183 {dimension_numbers = #tpu.dot_dimension_numbers<[1], [0], [0], [1], [0, 0, 1, 1], [], []>} : vector<2x32xf32>, vector<32x32xf32>, vector<2x32xf32> -> vector<2x32xf32>
    %391 = arith.addf %389, %390 : vector<2x32xf32>
    %392 = math.tanh %391 : vector<2x32xf32>
    %c3_184 = arith.constant 3 : index
    %393 = arith.index_cast %366 : i32 to index
    %c0_185 = arith.constant 0 : index
    %394 = vector.load %arg11[%c3_184, %393, %c0_185] : memref<4x16x32xf32, #tpu.memory_space<vmem>>, vector<1x2x32xf32>
    %395 = vector.shape_cast %394 : vector<1x2x32xf32> to vector<2x32xf32>
    %cst_186 = arith.constant dense<0.000000e+00> : vector<2x32xf32>
    %396 = tpu.matmul %362, %48, %cst_186 {dimension_numbers = #tpu.dot_dimension_numbers<[1], [0], [0], [1], [0, 0, 1, 1], [], []>} : vector<2x32xf32>, vector<32x32xf32>, vector<2x32xf32> -> vector<2x32xf32>
    %397 = arith.addf %395, %396 : vector<2x32xf32>
    %398 = arith.negf %397 : vector<2x32xf32>
    %399 = math.exp %398 : vector<2x32xf32>
    %cst_187 = arith.constant 1.000000e+00 : f32
    %400 = vector.broadcast %cst_187 : f32 to vector<2x32xf32>
    %401 = arith.addf %400, %399 : vector<2x32xf32>
    %402 = arith.divf %400, %401 : vector<2x32xf32>
    %403 = arith.mulf %386, %360 : vector<2x32xf32>
    %404 = arith.mulf %376, %392 : vector<2x32xf32>
    %405 = arith.addf %403, %404 : vector<2x32xf32>
    %406 = math.tanh %405 : vector<2x32xf32>
    %407 = arith.mulf %402, %406 : vector<2x32xf32>
    %408 = vector.extract_strided_slice %407 {offsets = [1, 0], sizes = [1, 32], strides = [1, 1]} : vector<2x32xf32> to vector<1x32xf32>
    %409 = arith.index_cast %c7_i32 : i32 to index
    %c0_188 = arith.constant 0 : index
    %410 = vector.load %arg12[%409, %c0_188] : memref<8x32xf32, #tpu.memory_space<vmem>>, vector<1x32xf32>
    tpu.vector_store %arg12[%409, %c0_188], %408 {strides = array<i32>} : memref<8x32xf32, #tpu.memory_space<vmem>>, vector<1x32xf32>,
    %c8_i32 = arith.constant 8 : i32
    %c0_189 = arith.constant 0 : index
    %c0_190 = arith.constant 0 : index
    %411 = vector.load %arg12[%c0_189, %c0_190] : memref<8x32xf32, #tpu.memory_space<vmem>>, vector<8x32xf32>
    %c0_191 = arith.constant 0 : index
    %c0_192 = arith.constant 0 : index
    %412 = vector.load %arg6[%c0_191, %c0_192] : memref<32x1xf32, #tpu.memory_space<vmem>>, vector<32x1xf32>
    %cst_193 = arith.constant dense<0.000000e+00> : vector<8x1xf32>
    %413 = tpu.matmul %411, %412, %cst_193 {dimension_numbers = #tpu.dot_dimension_numbers<[1], [0], [0], [1], [0, 0, 1, 1], [], []>} : vector<8x32xf32>, vector<32x1xf32>, vector<8x1xf32> -> vector<8x1xf32>
    %c0_194 = arith.constant 0 : index
    %c0_195 = arith.constant 0 : index
    %414 = vector.load %arg7[%c0_194, %c0_195] : memref<1x1xf32, #tpu.memory_space<vmem>>, vector<1x1xf32>
    %415 = vector.broadcast %414 : vector<1x1xf32> to vector<8x1xf32>
    %416 = arith.addf %413, %415 : vector<8x1xf32>
    %c0_196 = arith.constant 0 : index
    %c0_197 = arith.constant 0 : index
    %417 = vector.load %arg8[%c0_196, %c0_197] : memref<8x1xf32, #tpu.memory_space<vmem>>, vector<8x1xf32>
    tpu.vector_store %arg8[%c0_196, %c0_197], %416 {strides = array<i32>} : memref<8x1xf32, #tpu.memory_space<vmem>>, vector<8x1xf32>,
    %c0_198 = arith.constant 0 : index
    %c0_199 = arith.constant 0 : index
    %418 = vector.load %arg9[%c0_198, %c0_199] : memref<2x32xf32, #tpu.memory_space<vmem>>, vector<2x32xf32>
    tpu.vector_store %arg9[%c0_198, %c0_199], %407 {strides = array<i32>} : memref<2x32xf32, #tpu.memory_space<vmem>>, vector<2x32xf32>,
    %c0_200 = arith.constant 0 : index
    %c0_201 = arith.constant 0 : index
    %419 = vector.load %arg10[%c0_200, %c0_201] : memref<2x32xf32, #tpu.memory_space<vmem>>, vector<2x32xf32>
    tpu.vector_store %arg10[%c0_200, %c0_201], %405 {strides = array<i32>} : memref<2x32xf32, #tpu.memory_space<vmem>>, vector<2x32xf32>,
    return
  }
}

</mosaic_0001>

<bundles_post_ra>
// kernel: _predictor_forward.1
= control target key start
LH: loop header
LB: loop body
LE: loop exit
PB: predicated region body
PF: predicated region fallthrough
CT: control target
= control target key end

     0   :  { %s4599_s0 = inlined_call_operand.vmem [shape: f32[16,4], index: 0, kind: input, shape index: {}]   ;;  %s4600_s1 = inlined_call_operand.vmem [shape: f32[4,4,32], index: 1, kind: input, shape index: {}]   ;;  %s4601_s2 = inlined_call_operand.hbm [shape: f32[4,32,32], index: 2, kind: input, shape index: {}]   ;;  %s4602_s3 = inlined_call_operand.vmem [shape: f32[4,1,32], index: 3, kind: input, shape index: {}]   ;;  %s4603_s4 = inlined_call_operand.vmem [shape: f32[2,32], index: 4, kind: input, shape index: {}]   ;;  %s4604_s5 = inlined_call_operand.vmem [shape: f32[2,32], index: 5, kind: input, shape index: {}]   ;;  %s4605_s6 = inlined_call_operand.vmem [shape: f32[32,1], index: 6, kind: input, shape index: {}]   ;;  %s4606_s7 = inlined_call_operand.<no memory space> [shape: f32[1,1], index: 7, kind: input, shape index: {}]   ;;  %s4607_s8 = inlined_call_operand.vmem [shape: f32[8,1], index: 8, kind: output, shape index: {0}]   ;;  %s4608_s9 = inlined_call_operand.hbm [shape: f32[2,32], index: 9, kind: output, shape index: {1}]   ;;  %s4609_s10 = inlined_call_operand.hbm [shape: f32[2,32], index: 10, kind: output, shape index: {2}]  }
   0x1   :  { %v16_v0 = vstv %s4606_s7 }
   0x2   :  { %17 = vst [vmem:[#allocation4] sm:$0x1] %v16_v0 }
   0x3   :  { %18 = vsyncpa [#allocation6], 0 }
   0x4   :  { %19 = vsyncpa [#allocation7], 0 }
   0x5   :  { %20 = vsyncpa [#allocation10], 0  ;;  %s4141_s15 = smov [#allocation5]   ;;  %s4069_s19 = scalar_lea.hbm %s4601_s2, 2048 }
   0x6   :  { %s30_s16 = sshll.u32 %s4141_s15, 4  ;;  %p4070_p0 = scmp.ne.s32.totalorder %s4601_s2, %s4069_s19  ;;  %s31_s16 = int_to_ptr.vmem [resolvable:$true] %s30_s16 }
   0x7   :  { %p4073_p1 = scmp.lt.u32.totalorder %s4069_s19, %s4601_s2 }
   0x9   :  { %p4075_p2 = pnand %p4073_p1, %p4070_p0 }
   0xb   :  { %4078 = shalt.err (!%p4075_p2)
}
   0xc   :  { %s4079_s7 = scalar_lea.vmem %s31_s16, 2048  ;;  %p4084_p4 = scmp.lt.s32.totalorder %s31_s16, %s31_s16 }
   0xd   :  { %p4080_p3 = scmp.ne.s32.totalorder %s31_s16, %s4079_s7  ;;  %p4085_p5 = scmp.lt.s32.totalorder %s4079_s7, %s4079_s7 }
   0xf   :  { %p4086_p6 = por %p4085_p5, %p4084_p4 }
  0x11   :  { %p4087_p7 = pnand %p4086_p6, %p4080_p3 }
  0x13   :  { %4090 = shalt.err (!%p4087_p7)
}
  0x14   :  { %s4142_s24 = smov 128   ;;  %s4143_s25 = smov 8  }
  0x15   :  { %36 = dma.hbm_to_vmem [thread:$0]  %s4601_s2, 2048, %s31_s16, [#allocation6], %s4142_s24, %s4142_s24, %s4143_s25  }
  0x16   :  { %4135 = dma.done.wait [#allocation6], 2048  }
  0x17   :  { %4136 = vsyncadd [#allocation6], 4294965248  ;;  %vm67_vm0 = vcmask 1043456   ;;  %vm60_vm1 = vcmask 31744   ;;  %v52_v1 = vld [vmem:[%s4600_s1] sm:$0xf] }
  0x18   :  { %v50_v2 = vld [vmem:[%s4599_s0] sm:$0xff]  ;;  %v51_v3 = vld [vmem:[%s4599_s0 + $0x8] sm:$0xff]  ;;  %3352 = vmatprep.subr.msk.mxu1 %vm67_vm0, %v52_v1  ;;  %v423_v7 = vld [vmem:[#allocation5 + $0x8] sm:$0xff]  ;;  %v4144_v14 = vmov 0.0|0.0   ;;  %vm4145_vm2 = vmmov 0   ;;  %v4146_v21 = vmov 0.0  }
  0x19   :  { %3354 = vmatprep.mubr.msk.f32.mxu1 %vm60_vm1, %v50_v2  ;;  %v3099_v4 = vld [vmem:[%s4600_s1 + $0x4] sm:$0xf]  ;;  %v3105_v5 = vld [vmem:[%s4600_s1 + $0x8] sm:$0xf]  ;;  %3353 = vmatpush3.msk.msra.mxu1 %vm67_vm0, %v52_v1  ;;  %v3111_v8 = vld [vmem:[%s4600_s1 + $0xc] sm:$0xf] }
  0x1a   :  { %3362 = vmatprep.subr.msk.mxu0 %vm67_vm0, %v3105_v5  ;;  %v422_v6 = vld [vmem:[#allocation5] sm:$0xff]  ;;  %3355 = vmatmul.mubr.msk.f32.vlgmr.msra.gmra.mrb[0].mxu1 %vm60_vm1, %v51_v3  ;;  %v424_v10 = vld [vmem:[#allocation5 + $0x10] sm:$0xff]  ;;  %v425_v11 = vld [vmem:[#allocation5 + $0x18] sm:$0xff]  ;;  %vm146_vm3 = vcmask 261120   ;;  %vm758_vm4 = vcmask 254977   ;;  %vm3059_vm5 = vcmask 254976  }
  0x1b   :  { %3357 = vmatprep.subr.msk.mxu1 %vm67_vm0, %v3099_v4  ;;  %3363 = vmatpush3.msk.msra.mxu0 %vm67_vm0, %v3105_v5  ;;  %v4245_v9 = vpack.c.bf16 %v423_v7, %v422_v6  ;;  %v427_v12 = vld [vmem:[#allocation5 + $0x20] sm:$0xff]  ;;  %v428_v13 = vld [vmem:[#allocation5 + $0x28] sm:$0xff]  ;;  %v4255_v15 = vpack.c.bf16 %v425_v11, %v424_v10  ;;  %v429_v17 = vld [vmem:[#allocation5 + $0x30] sm:$0xff]  ;;  %s4148_s2 = smov [#allocation9]  }
  0x1c   :  { %3358 = vmatpush3.msk.msra.mxu1 %vm67_vm0, %v3099_v4  ;;  %3359 = vmatprep.mubr.msk.f32.mxu1 %vm60_vm1, %v50_v2  ;;  %v4257_v16 = vpack.c.bf16 %v428_v13, %v427_v12  ;;  %v430_v18 = vld [vmem:[#allocation5 + $0x38] sm:$0xff]  ;;  %v432_v19 = vld [vmem:[#allocation5 + $0x40] sm:$0xff]  ;;  %v433_v20 = vld [vmem:[#allocation5 + $0x48] sm:$0xff]  ;;  %s3080_s14 = sshll.u32 %s4148_s2, 4  ;;  %s3081_s14 = int_to_ptr.vmem [resolvable:$true] %s3080_s14 }
  0x1d   :  { %3364 = vmatprep.mubr.msk.f32.mxu0 %vm60_vm1, %v50_v2  ;;  %3735 = vmatprep.subr.bf16.mxu0 %v4144_v14  ;;  %v441_v22 = vld [vmem:[%s4603_s4] sm:$0x3]  ;;  %v4270_v23 = vpack.c.bf16 %v430_v18, %v429_v17  ;;  %v4272_v24 = vpack.c.bf16 %v433_v20, %v432_v19  ;;  %v437_v27 = vld [vmem:[#allocation5 + $0x60] sm:$0xff]  ;;  %v438_v28 = vld [vmem:[#allocation5 + $0x68] sm:$0xff] }
  0x1e   :  { %3365 = vmatmul.mubr.msk.f32.vlgmr.msra.gmra.mrb[0].mxu0 %vm60_vm1, %v51_v3  ;;  %3360 = vmatmul.mubr.msk.f32.vlgmr.msra.gmra.mrb[2].mxu1 %vm60_vm1, %v51_v3  ;;  %v434_v25 = vld [vmem:[#allocation5 + $0x50] sm:$0xff]  ;;  %v435_v26 = vld [vmem:[#allocation5 + $0x58] sm:$0xff]  ;;  %v4283_v30 = vpack.c.bf16 %v438_v28, %v437_v27 }
  0x1f   :  { %3367 = vmatprep.subr.msk.mxu1 %vm67_vm0, %v3111_v8  ;;  %3737 = vmatpush3.bf16.msra.mxu0 %v4245_v9  ;;  %v4281_v29 = vpack.c.bf16 %v435_v26, %v434_v25  ;;  %v439_v31 = vld [vmem:[#allocation5 + $0x70] sm:$0xff]  ;;  %v440_v32 = vld [vmem:[#allocation5 + $0x78] sm:$0xff] }
  0x20   :  { %3368 = vmatpush3.msk.msra.mxu1 %vm67_vm0, %v3111_v8  ;;  %3369 = vmatprep.mubr.msk.f32.mxu1 %vm60_vm1, %v50_v2  ;;  %v4292_v33 = vpack.c.bf16 %v440_v32, %v439_v31  ;;  %v3095_v34 = vld [vmem:[%s4602_s3] ss:$0 sm:$0xff]  ;;  %v3107_v38 = vld [vmem:[%s4602_s3 + $0x2] ss:$0 sm:$0xff]  ;;  %v3101_v40 = vld [vmem:[%s4602_s3 + $0x1] ss:$0 sm:$0xff] }
  0x21   :  { %3738 = vmatprep.subr.bf16.mxu0 %v4144_v14  ;;  %3741 = vmatprep.subr.bf16.mxu1 %v4144_v14  ;;  %v3113_v49 = vld [vmem:[%s4602_s3 + $0x3] ss:$0 sm:$0xff] }
  0x22   :  { %3380 = vmatprep.mubr.msk.f32.mxu0 %vm4145_vm2, %v4146_v21  ;;  %3370 = vmatmul.mubr.msk.f32.vlgmr.msra.gmra.mrb[4].mxu1 %vm60_vm1, %v51_v3 }
  0x23   :  { %3740 = vmatpush3.bf16.msra.mxu0 %v4255_v15  ;;  %3743 = vmatpush3.bf16.msra.mxu1 %v4257_v16 }
  0x24   :  { %3744 = vmatprep.subr.bf16.mxu1 %v4144_v14  ;;  %3747 = vmatprep.subr.bf16.mxu0 %v4144_v14 }
  0x25   :  { %3391 = vmatprep.mubr.msk.f32.mxu1 %vm4145_vm2, %v4146_v21 }
  0x26   :  { %3381 = vmatmul.mubr.msk.f32.vlgmr.msra.gmra.mrb[2].mxu0 %vm146_vm3, %v441_v22 }
  0x27   :  { %3746 = vmatpush3.bf16.msra.mxu1 %v4270_v23  ;;  %3749 = vmatpush3.bf16.msra.mxu0 %v4272_v24 }
  0x28   :  { %3750 = vmatprep.subr.bf16.mxu0 %v4144_v14  ;;  %3753 = vmatprep.subr.bf16.mxu1 %v4144_v14 }
  0x29   :  { %3402 = vmatprep.mubr.msk.f32.mxu0 %vm4145_vm2, %v4146_v21 }
  0x2a   :  { %3392 = vmatmul.mubr.msk.f32.vlgmr.msra.gmra.mrb[6].mxu1 %vm146_vm3, %v441_v22 }
  0x2b   :  { %3752 = vmatpush3.bf16.msra.mxu0 %v4281_v29  ;;  %3755 = vmatpush3.bf16.msra.mxu1 %v4283_v30 }
  0x2c   :  { %3756 = vmatprep.subr.bf16.mxu1 %v4144_v14  ;;  %3413 = vmatprep.mubr.msk.f32.mxu1 %vm4145_vm2, %v4146_v21 }
  0x2d   :  { %3759 = vmatprep.subr.bf16.mxu0 %v4144_v14 }
  0x2e   :  { %3403 = vmatmul.mubr.msk.f32.vlgmr.msra.gmra.mrb[4].mxu0 %vm146_vm3, %v441_v22 }
  0x2f   :  { %3758 = vmatpush3.bf16.msra.mxu1 %v4292_v33  ;;  %3761 = vmatpush3.bf16.msra.mxu0 %v4245_v9 }
  0x30   :  { %3765 = vmatprep.subr.bf16.mxu1 %v4144_v14  ;;  %3762 = vmatprep.subr.bf16.mxu0 %v4144_v14 }
  0x31   :  { %3424 = vmatprep.mubr.msk.f32.mxu0 %vm4145_vm2, %v4146_v21 }
  0x32   :  { %3414 = vmatmul.mubr.msk.f32.vlgmr.msra.gmra.mrb[8].mxu1 %vm146_vm3, %v441_v22  ;;  %v442_v22 = vld [vmem:[%s4604_s5] sm:$0x3] }
  0x33   :  { %3767 = vmatpush3.bf16.msra.mxu1 %v4257_v16  ;;  %3764 = vmatpush3.bf16.msra.mxu0 %v4255_v15 }
  0x34   :  { %3768 = vmatprep.subr.bf16.mxu1 %v4144_v14  ;;  %3435 = vmatprep.mubr.msk.f32.mxu1 %vm4145_vm2, %v4146_v21 }
  0x35   :  { %3771 = vmatprep.subr.bf16.mxu0 %v4144_v14 }
  0x37   :  { %3770 = vmatpush3.bf16.msra.mxu1 %v4270_v23 }
  0x38   :  { %3777 = vmatprep.subr.bf16.mxu1 %v4144_v14 }
  0xed   :  { %v3356_v35 = vpop.f32.mrb[0].mxu1 }
  0xee   :  { %v143_v36 = vadd.f32 %v3356_v35, %v3095_v34  ;;  %v137_v37 = vpop.f32.mrb[1].mxu1 }
  0xef   :  { %v138_v39 = vadd.f32 %v3095_v34, %v137_v37 }
  0xf0   :  { %148 = vst.msk [vmem:[#allocation2 + $0x8] sm:$0xff] %vm146_vm3, %v143_v36 }
  0xf1   :  { %v3366_v41 = vpop.f32.mrb[0].mxu0  ;;  %147 = vst.msk [vmem:[#allocation2] sm:$0xff] %vm146_vm3, %v138_v39  ;;  %v3361_v42 = vpop.f32.mrb[2].mxu1 }
  0xf2   :  { %v325_v43 = vadd.f32 %v3366_v41, %v3107_v38  ;;  %v319_v44 = vpop.f32.mrb[1].mxu0  ;;  %v234_v45 = vadd.f32 %v3361_v42, %v3101_v40  ;;  %v228_v46 = vpop.f32.mrb[3].mxu1 }
  0xf3   :  { %v320_v47 = vadd.f32 %v3107_v38, %v319_v44  ;;  %v229_v48 = vadd.f32 %v3101_v40, %v228_v46 }
  0xf4   :  { %330 = vst.msk [vmem:[#allocation2 + $0x28] sm:$0xff] %vm146_vm3, %v325_v43  ;;  %239 = vst.msk [vmem:[#allocation2 + $0x18] sm:$0xff] %vm146_vm3, %v234_v45 }
  0xf5   :  { %329 = vst.msk [vmem:[#allocation2 + $0x20] sm:$0xff] %vm146_vm3, %v320_v47  ;;  %238 = vst.msk [vmem:[#allocation2 + $0x10] sm:$0xff] %vm146_vm3, %v229_v48  ;;  %v3371_v50 = vpop.f32.mrb[4].mxu1 }
  0xf6   :  { %v416_v51 = vadd.f32 %v3371_v50, %v3113_v49  ;;  %v410_v52 = vpop.f32.mrb[5].mxu1 }
  0xf7   :  { %v411_v53 = vadd.f32 %v3113_v49, %v410_v52 }
  0xf8   :  { %421 = vst.msk [vmem:[#allocation2 + $0x38] sm:$0xff] %vm146_vm3, %v416_v51  ;;  %v443_v54 = vld [vmem:[#allocation2] sm:$0x3]  ;;  %v760_v35 = vld [vmem:[#allocation2 + $0x2] sm:$0x3] }
  0xf9   :  { %420 = vst.msk [vmem:[#allocation2 + $0x30] sm:$0xff] %vm146_vm3, %v411_v53  ;;  %v513_v55 = vpop.f32.mrb[2].mxu0 }
  0xfa   :  { %v517_v56 = vadd.f32 %v513_v55, %v443_v54  ;;  %v3382_v57 = vpop.f32.mrb[3].mxu0 }
  0xfc   :  { %v3118_v58 = vmul.f32 -1.442695, %v517_v56  ;;  %v524_v59 = vld [vmem:[#allocation2 + $0x10] sm:$0x3]  ;;  %v602_v2 = vld [vmem:[#allocation2 + $0x20] sm:$0x3] }
  0xfd   :  { %v591_v60 = vpop.f32.mrb[6].mxu1  ;;  %v841_v37 = vld [vmem:[#allocation2 + $0x12] sm:$0x3]  ;;  %v919_v51 = vld [vmem:[#allocation2 + $0x22] sm:$0x3] }
  0xfe   :  { %3941 = vpow2.f32 %v3118_v58  ;;  %v595_v61 = vadd.f32 %v591_v60, %v524_v59  ;;  %v3393_v62 = vpop.f32.mrb[7].mxu1 }
 0x100   :  { %v3120_v63 = vmul.f32 -1.442695, %v595_v61  ;;  %v675_v3 = vld [vmem:[#allocation2 + $0x30] sm:$0x3]  ;;  %v992_v46 = vld [vmem:[#allocation2 + $0x32] sm:$0x3] }
 0x101   :  { %v669_v0 = vpop.f32.mrb[4].mxu0 }
 0x102   :  { %3943 = vpow2.f32 %v3120_v63  ;;  %v3404_v1 = vpop.f32.mrb[5].mxu0  ;;  %v673_v5 = vadd.f32 %v669_v0, %v602_v2 }
 0x104   :  { %3945 = vtanh.f32 %v673_v5  ;;  %v1076_v5 = vld [vmem:[#allocation2 + $0x4] sm:$0x3] }
 0x105   :  { %v742_v4 = vpop.f32.mrb[8].mxu1 }
 0x106   :  { %v746_v6 = vadd.f32 %v742_v4, %v675_v3  ;;  %v3415_v7 = vpop.f32.mrb[9].mxu1 }
 0x107   :  { %v1157_v7 = vld [vmem:[#allocation2 + $0x14] sm:$0x3] }
 0x108   :  { %v3942_v8 = vpop.eup %3941  ;;  %v3123_v10 = vmul.f32 -1.442695, %v746_v6 }
 0x109   :  { %v521_v11 = vadd.f32 1.0, %v3942_v8 }
 0x10b   :  { %3947 = vrcp.f32 %v521_v11 }
 0x10c   :  { %v3944_v12 = vpop.eup %3943  ;;  %3949 = vpow2.f32 %v3123_v10 }
 0x10d   :  { %v599_v13 = vadd.f32 1.0, %v3944_v12 }
 0x10e   :  { %v3946_v17 = vpop.eup %3945 }
 0x10f   :  { %3951 = vrcp.f32 %v599_v13 }
 0x115   :  { %v3948_v18 = vpop.eup %3947 }
 0x116   :  { %v3950_v19 = vpop.eup %3949  ;;  %v754_v20 = vmul.f32 %v3948_v18, %v3946_v17 }
 0x117   :  { %v750_v26 = vadd.f32 1.0, %v3950_v19 }
 0x119   :  { %v3952_v25 = vpop.eup %3951  ;;  %3953 = vrcp.f32 %v750_v26 }
 0x11a   :  { %v753_v27 = vmul.f32 %v3952_v25, %v442_v22 }
 0x11c   :  { %v4337_v28 = vadd.f32 %v754_v20, %v753_v27  ;;  %v1308_v20 = vld [vmem:[#allocation2 + $0x34] sm:$0x3] }
 0x11e   :  { %3955 = vtanh.f32 %v4337_v28 }
 0x123   :  { %v3954_v31 = vpop.eup %3953 }
 0x128   :  { %v3956_v32 = vpop.eup %3955 }
 0x129   :  { %v757_v34 = vmul.f32 %v3956_v32, %v3954_v31 }
 0x12b   :  { %759 = vst.msk [vmem:[#allocation3 - $0x1] sm:$0x2] %vm758_vm4, %v757_v34  ;;  %3425 = vmatmul.mubr.msk.f32.vlgmr.msra.gmra.mrb[6].mxu0 %vm146_vm3, %v757_v34  ;;  %3436 = vmatmul.mubr.msk.f32.vlgmr.msra.gmra.mrb[10].mxu1 %vm146_vm3, %v757_v34 }
 0x12c   :  { %3773 = vmatpush3.bf16.msra.mxu0 %v4272_v24  ;;  %3779 = vmatpush3.bf16.msra.mxu1 %v4283_v30 }
 0x12d   :  { %3774 = vmatprep.subr.bf16.mxu0 %v4144_v14  ;;  %3780 = vmatprep.subr.bf16.mxu1 %v4144_v14 }
 0x12e   :  { %3446 = vmatprep.mubr.msk.f32.mxu0 %vm4145_vm2, %v4146_v21  ;;  %3457 = vmatprep.mubr.msk.f32.mxu1 %vm4145_vm2, %v4146_v21 }
 0x130   :  { %3776 = vmatpush3.bf16.msra.mxu0 %v4281_v29  ;;  %3782 = vmatpush3.bf16.msra.mxu1 %v4292_v33 }
 0x131   :  { %3783 = vmatprep.subr.bf16.mxu0 %v4144_v14  ;;  %3789 = vmatprep.subr.bf16.mxu1 %v4144_v14 }
 0x133   :  { %3447 = vmatmul.mubr.msk.f32.vlgmr.msra.gmra.mrb[8].mxu0 %vm146_vm3, %v757_v34  ;;  %3458 = vmatmul.mubr.msk.f32.vlgmr.msra.gmra.mrb[12].mxu1 %vm146_vm3, %v757_v34 }
 0x134   :  { %3785 = vmatpush3.bf16.msra.mxu0 %v4245_v9  ;;  %3791 = vmatpush3.bf16.msra.mxu1 %v4257_v16 }
 0x135   :  { %3786 = vmatprep.subr.bf16.mxu0 %v4144_v14  ;;  %3792 = vmatprep.subr.bf16.mxu1 %v4144_v14 }
 0x136   :  { %3468 = vmatprep.mubr.msk.f32.mxu0 %vm4145_vm2, %v4146_v21  ;;  %3479 = vmatprep.mubr.msk.f32.mxu1 %vm4145_vm2, %v4146_v21 }
 0x138   :  { %3788 = vmatpush3.bf16.msra.mxu0 %v4255_v15  ;;  %3794 = vmatpush3.bf16.msra.mxu1 %v4270_v23 }
 0x139   :  { %3795 = vmatprep.subr.bf16.mxu0 %v4144_v14  ;;  %3801 = vmatprep.subr.bf16.mxu1 %v4144_v14 }
 0x1fe   :  { %v830_v36 = vpop.f32.mrb[6].mxu0  ;;  %v908_v38 = vpop.f32.mrb[10].mxu1 }
 0x1ff   :  { %v834_v39 = vadd.f32 %v830_v36, %v760_v35  ;;  %v912_v40 = vadd.f32 %v908_v38, %v841_v37  ;;  %v3426_v41 = vpop.f32.mrb[7].mxu0  ;;  %v3437_v42 = vpop.f32.mrb[11].mxu1 }
 0x201   :  { %v3125_v43 = vmul.f32 -1.442695, %v834_v39  ;;  %v3127_v44 = vmul.f32 -1.442695, %v912_v40 }
 0x203   :  { %3957 = vpow2.f32 %v3125_v43 }
 0x204   :  { %3959 = vpow2.f32 %v3127_v44 }
 0x206   :  { %v986_v45 = vpop.f32.mrb[8].mxu0  ;;  %v1059_v47 = vpop.f32.mrb[12].mxu1 }
 0x207   :  { %v1063_v48 = vadd.f32 %v1059_v47, %v992_v46  ;;  %v3448_v49 = vpop.f32.mrb[9].mxu0  ;;  %v3459_v50 = vpop.f32.mrb[13].mxu1  ;;  %v990_v53 = vadd.f32 %v986_v45, %v919_v51  ;;  %v1473_v51 = vld [vmem:[#allocation2 + $0x16] sm:$0x3] }
 0x208   :  { %v1392_v49 = vld [vmem:[#allocation2 + $0x6] sm:$0x3] }
 0x209   :  { %v3130_v52 = vmul.f32 -1.442695, %v1063_v48 }
 0x20b   :  { %3961 = vpow2.f32 %v3130_v52 }
 0x20c   :  { %3963 = vtanh.f32 %v990_v53 }
 0x20d   :  { %v3958_v54 = vpop.eup %3957 }
 0x20e   :  { %v3960_v55 = vpop.eup %3959  ;;  %v838_v56 = vadd.f32 1.0, %v3958_v54 }
 0x20f   :  { %v916_v57 = vadd.f32 1.0, %v3960_v55 }
 0x210   :  { %3965 = vrcp.f32 %v838_v56 }
 0x211   :  { %3967 = vrcp.f32 %v916_v57 }
 0x215   :  { %v3962_v58 = vpop.eup %3961 }
 0x216   :  { %v3964_v59 = vpop.eup %3963  ;;  %v1067_v63 = vadd.f32 1.0, %v3962_v58 }
 0x218   :  { %3969 = vrcp.f32 %v1067_v63 }
 0x21a   :  { %v3966_v60 = vpop.eup %3965 }
 0x21b   :  { %v3968_v61 = vpop.eup %3967  ;;  %v1071_v62 = vmul.f32 %v3966_v60, %v3964_v59  ;;  %v1624_v60 = vld [vmem:[#allocation2 + $0x36] sm:$0x3] }
 0x21c   :  { %v1070_v0 = vmul.f32 %v3968_v61, %v4337_v28  ;;  %v1235_v28 = vld [vmem:[#allocation2 + $0x24] sm:$0x3] }
 0x21e   :  { %v4370_v1 = vadd.f32 %v1071_v62, %v1070_v0 }
 0x220   :  { %3971 = vtanh.f32 %v4370_v1 }
 0x222   :  { %v3970_v2 = vpop.eup %3969 }
 0x22a   :  { %v3972_v3 = vpop.eup %3971 }
 0x22b   :  { %v1074_v4 = vmul.f32 %v3972_v3, %v3970_v2 }
 0x22d   :  { %1075 = vst.msk [vmem:[#allocation3] sm:$0x2] %vm758_vm4, %v1074_v4  ;;  %3469 = vmatmul.mubr.msk.f32.vlgmr.msra.gmra.mrb[10].mxu0 %vm146_vm3, %v1074_v4  ;;  %3480 = vmatmul.mubr.msk.f32.vlgmr.msra.gmra.mrb[14].mxu1 %vm146_vm3, %v1074_v4 }
 0x22e   :  { %3797 = vmatpush3.bf16.msra.mxu0 %v4272_v24  ;;  %3803 = vmatpush3.bf16.msra.mxu1 %v4283_v30 }
 0x22f   :  { %3798 = vmatprep.subr.bf16.mxu0 %v4144_v14  ;;  %3804 = vmatprep.subr.bf16.mxu1 %v4144_v14 }
 0x230   :  { %3490 = vmatprep.mubr.msk.f32.mxu0 %vm4145_vm2, %v4146_v21  ;;  %3501 = vmatprep.mubr.msk.f32.mxu1 %vm4145_vm2, %v4146_v21 }
 0x232   :  { %3800 = vmatpush3.bf16.msra.mxu0 %v4281_v29  ;;  %3806 = vmatpush3.bf16.msra.mxu1 %v4292_v33 }
 0x233   :  { %3807 = vmatprep.subr.bf16.mxu0 %v4144_v14  ;;  %3813 = vmatprep.subr.bf16.mxu1 %v4144_v14 }
 0x235   :  { %3491 = vmatmul.mubr.msk.f32.vlgmr.msra.gmra.mrb[12].mxu0 %vm146_vm3, %v1074_v4  ;;  %3502 = vmatmul.mubr.msk.f32.vlgmr.msra.gmra.mrb[16].mxu1 %vm146_vm3, %v1074_v4 }
 0x236   :  { %3809 = vmatpush3.bf16.msra.mxu0 %v4245_v9  ;;  %3815 = vmatpush3.bf16.msra.mxu1 %v4257_v16 }
 0x237   :  { %3810 = vmatprep.subr.bf16.mxu0 %v4144_v14  ;;  %3816 = vmatprep.subr.bf16.mxu1 %v4144_v14 }
 0x238   :  { %3512 = vmatprep.mubr.msk.f32.mxu0 %vm4145_vm2, %v4146_v21  ;;  %3523 = vmatprep.mubr.msk.f32.mxu1 %vm4145_vm2, %v4146_v21 }
 0x23a   :  { %3812 = vmatpush3.bf16.msra.mxu0 %v4255_v15  ;;  %3818 = vmatpush3.bf16.msra.mxu1 %v4270_v23 }
 0x23b   :  { %3819 = vmatprep.subr.bf16.mxu0 %v4144_v14  ;;  %3825 = vmatprep.subr.bf16.mxu1 %v4144_v14 }
 0x300   :  { %v1146_v6 = vpop.f32.mrb[10].mxu0  ;;  %v1224_v8 = vpop.f32.mrb[14].mxu1 }
 0x301   :  { %v1150_v10 = vadd.f32 %v1146_v6, %v1076_v5  ;;  %v1228_v11 = vadd.f32 %v1224_v8, %v1157_v7  ;;  %v3470_v12 = vpop.f32.mrb[11].mxu0  ;;  %v3481_v13 = vpop.f32.mrb[15].mxu1 }
 0x303   :  { %v3132_v17 = vmul.f32 -1.442695, %v1150_v10  ;;  %v3134_v18 = vmul.f32 -1.442695, %v1228_v11 }
 0x305   :  { %3973 = vpow2.f32 %v3132_v17 }
 0x306   :  { %3975 = vpow2.f32 %v3134_v18 }
 0x308   :  { %v1302_v19 = vpop.f32.mrb[12].mxu0  ;;  %v1375_v22 = vpop.f32.mrb[16].mxu1 }
 0x309   :  { %v1379_v25 = vadd.f32 %v1375_v22, %v1308_v20  ;;  %v3492_v26 = vpop.f32.mrb[13].mxu0  ;;  %v3503_v27 = vpop.f32.mrb[17].mxu1  ;;  %v1306_v32 = vadd.f32 %v1302_v19, %v1235_v28  ;;  %v1789_v28 = vld [vmem:[#allocation2 + $0x18] sm:$0x3] }
 0x30a   :  { %v1708_v26 = vld [vmem:[#allocation2 + $0x8] sm:$0x3] }
 0x30b   :  { %v3137_v31 = vmul.f32 -1.442695, %v1379_v25 }
 0x30d   :  { %3977 = vpow2.f32 %v3137_v31 }
 0x30e   :  { %3979 = vtanh.f32 %v1306_v32 }
 0x30f   :  { %v3974_v34 = vpop.eup %3973 }
 0x310   :  { %v3976_v35 = vpop.eup %3975  ;;  %v1154_v36 = vadd.f32 1.0, %v3974_v34 }
 0x311   :  { %v1232_v37 = vadd.f32 1.0, %v3976_v35 }
 0x312   :  { %3981 = vrcp.f32 %v1154_v36 }
 0x313   :  { %3983 = vrcp.f32 %v1232_v37 }
 0x317   :  { %v3978_v38 = vpop.eup %3977 }
 0x318   :  { %v3980_v39 = vpop.eup %3979  ;;  %v1383_v43 = vadd.f32 1.0, %v3978_v38 }
 0x31a   :  { %3985 = vrcp.f32 %v1383_v43 }
 0x31c   :  { %v3982_v40 = vpop.eup %3981 }
 0x31d   :  { %v3984_v41 = vpop.eup %3983  ;;  %v1387_v42 = vmul.f32 %v3982_v40, %v3980_v39  ;;  %v1940_v40 = vld [vmem:[#allocation2 + $0x38] sm:$0x3] }
 0x31e   :  { %v1386_v44 = vmul.f32 %v3984_v41, %v4370_v1  ;;  %v1551_v1 = vld [vmem:[#allocation2 + $0x26] sm:$0x3] }
 0x320   :  { %v4403_v45 = vadd.f32 %v1387_v42, %v1386_v44 }
 0x322   :  { %3987 = vtanh.f32 %v4403_v45 }
 0x324   :  { %v3986_v46 = vpop.eup %3985 }
 0x32c   :  { %v3988_v47 = vpop.eup %3987 }
 0x32d   :  { %v1390_v48 = vmul.f32 %v3988_v47, %v3986_v46 }
 0x32f   :  { %1391 = vst.msk [vmem:[#allocation3 + $0x1] sm:$0x2] %vm758_vm4, %v1390_v48  ;;  %3513 = vmatmul.mubr.msk.f32.vlgmr.msra.gmra.mrb[14].mxu0 %vm146_vm3, %v1390_v48  ;;  %3524 = vmatmul.mubr.msk.f32.vlgmr.msra.gmra.mrb[18].mxu1 %vm146_vm3, %v1390_v48 }
 0x330   :  { %3821 = vmatpush3.bf16.msra.mxu0 %v4272_v24  ;;  %3827 = vmatpush3.bf16.msra.mxu1 %v4283_v30 }
 0x331   :  { %3822 = vmatprep.subr.bf16.mxu0 %v4144_v14  ;;  %3828 = vmatprep.subr.bf16.mxu1 %v4144_v14 }
 0x332   :  { %3534 = vmatprep.mubr.msk.f32.mxu0 %vm4145_vm2, %v4146_v21  ;;  %3545 = vmatprep.mubr.msk.f32.mxu1 %vm4145_vm2, %v4146_v21 }
 0x334   :  { %3824 = vmatpush3.bf16.msra.mxu0 %v4281_v29  ;;  %3830 = vmatpush3.bf16.msra.mxu1 %v4292_v33 }
 0x335   :  { %3831 = vmatprep.subr.bf16.mxu0 %v4144_v14  ;;  %3837 = vmatprep.subr.bf16.mxu1 %v4144_v14 }
 0x337   :  { %3535 = vmatmul.mubr.msk.f32.vlgmr.msra.gmra.mrb[16].mxu0 %vm146_vm3, %v1390_v48  ;;  %3546 = vmatmul.mubr.msk.f32.vlgmr.msra.gmra.mrb[20].mxu1 %vm146_vm3, %v1390_v48 }
 0x338   :  { %3833 = vmatpush3.bf16.msra.mxu0 %v4245_v9  ;;  %3839 = vmatpush3.bf16.msra.mxu1 %v4257_v16 }
 0x339   :  { %3834 = vmatprep.subr.bf16.mxu0 %v4144_v14  ;;  %3840 = vmatprep.subr.bf16.mxu1 %v4144_v14 }
 0x33a   :  { %3556 = vmatprep.mubr.msk.f32.mxu0 %vm4145_vm2, %v4146_v21  ;;  %3567 = vmatprep.mubr.msk.f32.mxu1 %vm4145_vm2, %v4146_v21 }
 0x33c   :  { %3836 = vmatpush3.bf16.msra.mxu0 %v4255_v15  ;;  %3842 = vmatpush3.bf16.msra.mxu1 %v4270_v23 }
 0x33d   :  { %3843 = vmatprep.subr.bf16.mxu0 %v4144_v14  ;;  %3849 = vmatprep.subr.bf16.mxu1 %v4144_v14 }
 0x402   :  { %v1462_v50 = vpop.f32.mrb[14].mxu0  ;;  %v1540_v52 = vpop.f32.mrb[18].mxu1 }
 0x403   :  { %v1466_v53 = vadd.f32 %v1462_v50, %v1392_v49  ;;  %v1544_v54 = vadd.f32 %v1540_v52, %v1473_v51  ;;  %v3514_v55 = vpop.f32.mrb[15].mxu0  ;;  %v3525_v56 = vpop.f32.mrb[19].mxu1 }
 0x405   :  { %v3139_v57 = vmul.f32 -1.442695, %v1466_v53  ;;  %v3141_v58 = vmul.f32 -1.442695, %v1544_v54 }
 0x407   :  { %3989 = vpow2.f32 %v3139_v57 }
 0x408   :  { %3991 = vpow2.f32 %v3141_v58 }
 0x40a   :  { %v1618_v59 = vpop.f32.mrb[16].mxu0  ;;  %v1691_v61 = vpop.f32.mrb[20].mxu1 }
 0x40b   :  { %v1695_v62 = vadd.f32 %v1691_v61, %v1624_v60  ;;  %v3536_v63 = vpop.f32.mrb[17].mxu0  ;;  %v3547_v0 = vpop.f32.mrb[21].mxu1  ;;  %v1622_v3 = vadd.f32 %v1618_v59, %v1551_v1  ;;  %v2105_v1 = vld [vmem:[#allocation2 + $0x1a] sm:$0x3] }
 0x40c   :  { %v2024_v63 = vld [vmem:[#allocation2 + $0xa] sm:$0x3] }
 0x40d   :  { %v3144_v2 = vmul.f32 -1.442695, %v1695_v62 }
 0x40f   :  { %3993 = vpow2.f32 %v3144_v2 }
 0x410   :  { %3995 = vtanh.f32 %v1622_v3 }
 0x411   :  { %v3990_v4 = vpop.eup %3989 }
 0x412   :  { %v3992_v5 = vpop.eup %3991  ;;  %v1470_v6 = vadd.f32 1.0, %v3990_v4 }
 0x413   :  { %v1548_v7 = vadd.f32 1.0, %v3992_v5 }
 0x414   :  { %3997 = vrcp.f32 %v1470_v6 }
 0x415   :  { %3999 = vrcp.f32 %v1548_v7 }
 0x419   :  { %v3994_v8 = vpop.eup %3993 }
 0x41a   :  { %v3996_v10 = vpop.eup %3995  ;;  %v1699_v17 = vadd.f32 1.0, %v3994_v8 }
 0x41c   :  { %4001 = vrcp.f32 %v1699_v17 }
 0x41e   :  { %v3998_v11 = vpop.eup %3997 }
 0x41f   :  { %v4000_v12 = vpop.eup %3999  ;;  %v1703_v13 = vmul.f32 %v3998_v11, %v3996_v10  ;;  %v2256_v11 = vld [vmem:[#allocation2 + $0x3a] sm:$0x3] }
 0x420   :  { %v1702_v18 = vmul.f32 %v4000_v12, %v4403_v45  ;;  %v1867_v45 = vld [vmem:[#allocation2 + $0x28] sm:$0x3] }
 0x422   :  { %v4436_v19 = vadd.f32 %v1703_v13, %v1702_v18 }
 0x424   :  { %4003 = vtanh.f32 %v4436_v19 }
 0x426   :  { %v4002_v20 = vpop.eup %4001 }
 0x42e   :  { %v4004_v22 = vpop.eup %4003 }
 0x42f   :  { %v1706_v25 = vmul.f32 %v4004_v22, %v4002_v20 }
 0x431   :  { %1707 = vst.msk [vmem:[#allocation3 + $0x2] sm:$0x2] %vm758_vm4, %v1706_v25  ;;  %3557 = vmatmul.mubr.msk.f32.vlgmr.msra.gmra.mrb[18].mxu0 %vm146_vm3, %v1706_v25  ;;  %3568 = vmatmul.mubr.msk.f32.vlgmr.msra.gmra.mrb[22].mxu1 %vm146_vm3, %v1706_v25 }
 0x432   :  { %3845 = vmatpush3.bf16.msra.mxu0 %v4272_v24  ;;  %3851 = vmatpush3.bf16.msra.mxu1 %v4283_v30 }
 0x433   :  { %3846 = vmatprep.subr.bf16.mxu0 %v4144_v14  ;;  %3852 = vmatprep.subr.bf16.mxu1 %v4144_v14 }
 0x434   :  { %3578 = vmatprep.mubr.msk.f32.mxu0 %vm4145_vm2, %v4146_v21  ;;  %3589 = vmatprep.mubr.msk.f32.mxu1 %vm4145_vm2, %v4146_v21 }
 0x436   :  { %3848 = vmatpush3.bf16.msra.mxu0 %v4281_v29  ;;  %3854 = vmatpush3.bf16.msra.mxu1 %v4292_v33 }
 0x437   :  { %3855 = vmatprep.subr.bf16.mxu0 %v4144_v14  ;;  %3861 = vmatprep.subr.bf16.mxu1 %v4144_v14 }
 0x439   :  { %3579 = vmatmul.mubr.msk.f32.vlgmr.msra.gmra.mrb[20].mxu0 %vm146_vm3, %v1706_v25  ;;  %3590 = vmatmul.mubr.msk.f32.vlgmr.msra.gmra.mrb[24].mxu1 %vm146_vm3, %v1706_v25 }
 0x43a   :  { %3857 = vmatpush3.bf16.msra.mxu0 %v4245_v9  ;;  %3863 = vmatpush3.bf16.msra.mxu1 %v4257_v16 }
 0x43b   :  { %3858 = vmatprep.subr.bf16.mxu0 %v4144_v14  ;;  %3864 = vmatprep.subr.bf16.mxu1 %v4144_v14 }
 0x43c   :  { %3600 = vmatprep.mubr.msk.f32.mxu0 %vm4145_vm2, %v4146_v21  ;;  %3611 = vmatprep.mubr.msk.f32.mxu1 %vm4145_vm2, %v4146_v21 }
 0x43e   :  { %3860 = vmatpush3.bf16.msra.mxu0 %v4255_v15  ;;  %3866 = vmatpush3.bf16.msra.mxu1 %v4270_v23 }
 0x43f   :  { %3867 = vmatprep.subr.bf16.mxu0 %v4144_v14  ;;  %3873 = vmatprep.subr.bf16.mxu1 %v4144_v14 }
 0x504   :  { %v1778_v27 = vpop.f32.mrb[18].mxu0  ;;  %v1856_v31 = vpop.f32.mrb[22].mxu1 }
 0x505   :  { %v1782_v32 = vadd.f32 %v1778_v27, %v1708_v26  ;;  %v1860_v34 = vadd.f32 %v1856_v31, %v1789_v28  ;;  %v3558_v35 = vpop.f32.mrb[19].mxu0  ;;  %v3569_v36 = vpop.f32.mrb[23].mxu1 }
 0x507   :  { %v3146_v37 = vmul.f32 -1.442695, %v1782_v32  ;;  %v3148_v38 = vmul.f32 -1.442695, %v1860_v34 }
 0x509   :  { %4005 = vpow2.f32 %v3146_v37 }
 0x50a   :  { %4007 = vpow2.f32 %v3148_v38 }
 0x50c   :  { %v1934_v39 = vpop.f32.mrb[20].mxu0  ;;  %v2007_v41 = vpop.f32.mrb[24].mxu1 }
 0x50d   :  { %v2011_v42 = vadd.f32 %v2007_v41, %v1940_v40  ;;  %v3580_v43 = vpop.f32.mrb[21].mxu0  ;;  %v3591_v44 = vpop.f32.mrb[25].mxu1  ;;  %v1938_v47 = vadd.f32 %v1934_v39, %v1867_v45 }
 0x50e   :  { %v2421_v43 = vld [vmem:[#allocation2 + $0x1c] sm:$0x3] }
 0x50f   :  { %v3151_v46 = vmul.f32 -1.442695, %v2011_v42 }
 0x511   :  { %4009 = vpow2.f32 %v3151_v46 }
 0x512   :  { %4011 = vtanh.f32 %v1938_v47 }
 0x513   :  { %v4006_v48 = vpop.eup %4005 }
 0x514   :  { %v4008_v49 = vpop.eup %4007  ;;  %v1786_v50 = vadd.f32 1.0, %v4006_v48 }
 0x515   :  { %v1864_v51 = vadd.f32 1.0, %v4008_v49 }
 0x516   :  { %4013 = vrcp.f32 %v1786_v50 }
 0x517   :  { %4015 = vrcp.f32 %v1864_v51 }
 0x51b   :  { %v4010_v52 = vpop.eup %4009 }
 0x51c   :  { %v4012_v53 = vpop.eup %4011  ;;  %v2015_v57 = vadd.f32 1.0, %v4010_v52 }
 0x51e   :  { %4017 = vrcp.f32 %v2015_v57 }
 0x520   :  { %v4014_v54 = vpop.eup %4013 }
 0x521   :  { %v4016_v55 = vpop.eup %4015  ;;  %v2019_v56 = vmul.f32 %v4014_v54, %v4012_v53 }
 0x522   :  { %v2018_v58 = vmul.f32 %v4016_v55, %v4436_v19  ;;  %v2183_v19 = vld [vmem:[#allocation2 + $0x2a] sm:$0x3]  ;;  %v2499_v55 = vld [vmem:[#allocation2 + $0x2c] sm:$0x3] }
 0x524   :  { %v4469_v59 = vadd.f32 %v2019_v56, %v2018_v58 }
 0x526   :  { %4019 = vtanh.f32 %v4469_v59 }
 0x528   :  { %v4018_v60 = vpop.eup %4017 }
 0x530   :  { %v4020_v61 = vpop.eup %4019 }
 0x531   :  { %v2022_v62 = vmul.f32 %v4020_v61, %v4018_v60 }
 0x533   :  { %2023 = vst.msk [vmem:[#allocation3 + $0x3] sm:$0x2] %vm758_vm4, %v2022_v62  ;;  %3601 = vmatmul.mubr.msk.f32.vlgmr.msra.gmra.mrb[22].mxu0 %vm146_vm3, %v2022_v62  ;;  %3612 = vmatmul.mubr.msk.f32.vlgmr.msra.gmra.mrb[26].mxu1 %vm146_vm3, %v2022_v62 }
 0x534   :  { %3869 = vmatpush3.bf16.msra.mxu0 %v4272_v24  ;;  %3875 = vmatpush3.bf16.msra.mxu1 %v4283_v30 }
 0x535   :  { %3870 = vmatprep.subr.bf16.mxu0 %v4144_v14  ;;  %3876 = vmatprep.subr.bf16.mxu1 %v4144_v14 }
 0x536   :  { %3622 = vmatprep.mubr.msk.f32.mxu0 %vm4145_vm2, %v4146_v21  ;;  %3633 = vmatprep.mubr.msk.f32.mxu1 %vm4145_vm2, %v4146_v21 }
 0x538   :  { %3872 = vmatpush3.bf16.msra.mxu0 %v4281_v29  ;;  %3878 = vmatpush3.bf16.msra.mxu1 %v4292_v33 }
 0x539   :  { %3879 = vmatprep.subr.bf16.mxu0 %v4144_v14  ;;  %3885 = vmatprep.subr.bf16.mxu1 %v4144_v14 }
 0x53b   :  { %3623 = vmatmul.mubr.msk.f32.vlgmr.msra.gmra.mrb[24].mxu0 %vm146_vm3, %v2022_v62  ;;  %3634 = vmatmul.mubr.msk.f32.vlgmr.msra.gmra.mrb[28].mxu1 %vm146_vm3, %v2022_v62 }
 0x53c   :  { %3881 = vmatpush3.bf16.msra.mxu0 %v4245_v9  ;;  %3887 = vmatpush3.bf16.msra.mxu1 %v4257_v16 }
 0x53d   :  { %3882 = vmatprep.subr.bf16.mxu0 %v4144_v14  ;;  %3888 = vmatprep.subr.bf16.mxu1 %v4144_v14 }
 0x53e   :  { %3644 = vmatprep.mubr.msk.f32.mxu0 %vm4145_vm2, %v4146_v21  ;;  %3655 = vmatprep.mubr.msk.f32.mxu1 %vm4145_vm2, %v4146_v21 }
 0x540   :  { %3884 = vmatpush3.bf16.msra.mxu0 %v4255_v15  ;;  %3890 = vmatpush3.bf16.msra.mxu1 %v4270_v23 }
 0x541   :  { %3891 = vmatprep.subr.bf16.mxu0 %v4144_v14  ;;  %3897 = vmatprep.subr.bf16.mxu1 %v4144_v14 }
 0x606   :  { %v2094_v0 = vpop.f32.mrb[22].mxu0  ;;  %v2172_v2 = vpop.f32.mrb[26].mxu1 }
 0x607   :  { %v2098_v3 = vadd.f32 %v2094_v0, %v2024_v63  ;;  %v2176_v4 = vadd.f32 %v2172_v2, %v2105_v1  ;;  %v3602_v5 = vpop.f32.mrb[23].mxu0  ;;  %v3613_v6 = vpop.f32.mrb[27].mxu1 }
 0x609   :  { %v3153_v7 = vmul.f32 -1.442695, %v2098_v3  ;;  %v3155_v8 = vmul.f32 -1.442695, %v2176_v4 }
 0x60b   :  { %4021 = vpow2.f32 %v3153_v7 }
 0x60c   :  { %4023 = vpow2.f32 %v3155_v8 }
 0x60e   :  { %v2250_v10 = vpop.f32.mrb[24].mxu0  ;;  %v2323_v12 = vpop.f32.mrb[28].mxu1 }
 0x60f   :  { %v2327_v13 = vadd.f32 %v2323_v12, %v2256_v11  ;;  %v3624_v17 = vpop.f32.mrb[25].mxu0  ;;  %v3635_v18 = vpop.f32.mrb[29].mxu1  ;;  %v2254_v22 = vadd.f32 %v2250_v10, %v2183_v19  ;;  %v2976_v10 = vld [vmem:[%s4605_s6 + $0x18] sm:$0xff] }
 0x611   :  { %v3158_v20 = vmul.f32 -1.442695, %v2327_v13  ;;  %v2737_v13 = vld [vmem:[#allocation2 + $0x1e] sm:$0x3] }
 0x613   :  { %4025 = vpow2.f32 %v3158_v20 }
 0x614   :  { %4027 = vtanh.f32 %v2254_v22 }
 0x615   :  { %v4022_v25 = vpop.eup %4021 }
 0x616   :  { %v4024_v26 = vpop.eup %4023  ;;  %v2102_v27 = vadd.f32 1.0, %v4022_v25 }
 0x617   :  { %v2180_v28 = vadd.f32 1.0, %v4024_v26 }
 0x618   :  { %4029 = vrcp.f32 %v2102_v27 }
 0x619   :  { %4031 = vrcp.f32 %v2180_v28  ;;  %v2888_v28 = vld [vmem:[#allocation2 + $0x3e] sm:$0x3] }
 0x61d   :  { %v4026_v31 = vpop.eup %4025 }
 0x61e   :  { %v4028_v32 = vpop.eup %4027  ;;  %v2331_v37 = vadd.f32 1.0, %v4026_v31 }
 0x620   :  { %4033 = vrcp.f32 %v2331_v37 }
 0x622   :  { %v4030_v34 = vpop.eup %4029 }
 0x623   :  { %v4032_v35 = vpop.eup %4031  ;;  %v2335_v36 = vmul.f32 %v4030_v34, %v4028_v32 }
 0x624   :  { %v2334_v38 = vmul.f32 %v4032_v35, %v4469_v59 }
 0x626   :  { %v4502_v39 = vadd.f32 %v2335_v36, %v2334_v38 }
 0x628   :  { %4035 = vtanh.f32 %v4502_v39 }
 0x62a   :  { %v4034_v40 = vpop.eup %4033 }
 0x632   :  { %v4036_v41 = vpop.eup %4035 }
 0x633   :  { %v2338_v42 = vmul.f32 %v4036_v41, %v4034_v40 }
 0x635   :  { %2339 = vst.msk [vmem:[#allocation3 + $0x4] sm:$0x2] %vm758_vm4, %v2338_v42  ;;  %3645 = vmatmul.mubr.msk.f32.vlgmr.msra.gmra.mrb[26].mxu0 %vm146_vm3, %v2338_v42  ;;  %3656 = vmatmul.mubr.msk.f32.vlgmr.msra.gmra.mrb[30].mxu1 %vm146_vm3, %v2338_v42 }
 0x636   :  { %3893 = vmatpush3.bf16.msra.mxu0 %v4272_v24  ;;  %3899 = vmatpush3.bf16.msra.mxu1 %v4283_v30 }
 0x637   :  { %3894 = vmatprep.subr.bf16.mxu0 %v4144_v14  ;;  %3900 = vmatprep.subr.bf16.mxu1 %v4144_v14 }
 0x638   :  { %3666 = vmatprep.mubr.msk.f32.mxu0 %vm4145_vm2, %v4146_v21  ;;  %3677 = vmatprep.mubr.msk.f32.mxu1 %vm4145_vm2, %v4146_v21 }
 0x63a   :  { %3896 = vmatpush3.bf16.msra.mxu0 %v4281_v29  ;;  %3902 = vmatpush3.bf16.msra.mxu1 %v4292_v33 }
 0x63b   :  { %3903 = vmatprep.subr.bf16.mxu0 %v4144_v14  ;;  %3909 = vmatprep.subr.bf16.mxu1 %v4144_v14 }
 0x63d   :  { %3667 = vmatmul.mubr.msk.f32.vlgmr.msra.gmra.mrb[28].mxu0 %vm146_vm3, %v2338_v42  ;;  %3678 = vmatmul.mubr.msk.f32.vlgmr.msra.gmra.mrb[32].mxu1 %vm146_vm3, %v2338_v42 }
 0x63e   :  { %3905 = vmatpush3.bf16.msra.mxu0 %v4245_v9  ;;  %3911 = vmatpush3.bf16.msra.mxu1 %v4257_v16  ;;  %v2340_v9 = vld [vmem:[#allocation2 + $0xc] sm:$0x3] }
 0x63f   :  { %3906 = vmatprep.subr.bf16.mxu0 %v4144_v14  ;;  %3912 = vmatprep.subr.bf16.mxu1 %v4144_v14 }
 0x640   :  { %3688 = vmatprep.mubr.msk.f32.mxu0 %vm4145_vm2, %v4146_v21  ;;  %3699 = vmatprep.mubr.msk.f32.mxu1 %vm4145_vm2, %v4146_v21 }
 0x642   :  { %3908 = vmatpush3.bf16.msra.mxu0 %v4255_v15  ;;  %3914 = vmatpush3.bf16.msra.mxu1 %v4270_v23  ;;  %v2572_v15 = vld [vmem:[#allocation2 + $0x3c] sm:$0x3] }
 0x643   :  { %3915 = vmatprep.subr.bf16.mxu0 %v4144_v14  ;;  %3921 = vmatprep.subr.bf16.mxu1 %v4144_v14 }
 0x708   :  { %v2410_v16 = vpop.f32.mrb[26].mxu0  ;;  %v2488_v44 = vpop.f32.mrb[30].mxu1 }
 0x709   :  { %v2414_v45 = vadd.f32 %v2410_v16, %v2340_v9  ;;  %v2492_v46 = vadd.f32 %v2488_v44, %v2421_v43  ;;  %v3646_v47 = vpop.f32.mrb[27].mxu0  ;;  %v3657_v48 = vpop.f32.mrb[31].mxu1 }
 0x70b   :  { %v3160_v49 = vmul.f32 -1.442695, %v2414_v45  ;;  %v3162_v50 = vmul.f32 -1.442695, %v2492_v46 }
 0x70d   :  { %4037 = vpow2.f32 %v3160_v49 }
 0x70e   :  { %4039 = vpow2.f32 %v3162_v50 }
 0x710   :  { %v2566_v51 = vpop.f32.mrb[28].mxu0  ;;  %v2639_v52 = vpop.f32.mrb[32].mxu1 }
 0x711   :  { %v2643_v23 = vadd.f32 %v2639_v52, %v2572_v15  ;;  %v3668_v53 = vpop.f32.mrb[29].mxu0  ;;  %v3679_v54 = vpop.f32.mrb[33].mxu1  ;;  %v2570_v57 = vadd.f32 %v2566_v51, %v2499_v55 }
 0x713   :  { %v3165_v56 = vmul.f32 -1.442695, %v2643_v23 }
 0x715   :  { %4041 = vpow2.f32 %v3165_v56 }
 0x716   :  { %4043 = vtanh.f32 %v2570_v57 }
 0x717   :  { %v4038_v58 = vpop.eup %4037 }
 0x718   :  { %v4040_v59 = vpop.eup %4039  ;;  %v2418_v60 = vadd.f32 1.0, %v4038_v58 }
 0x719   :  { %v2496_v61 = vadd.f32 1.0, %v4040_v59 }
 0x71a   :  { %4045 = vrcp.f32 %v2418_v60 }
 0x71b   :  { %4047 = vrcp.f32 %v2496_v61 }
 0x71f   :  { %v4042_v62 = vpop.eup %4041 }
 0x720   :  { %v4044_v63 = vpop.eup %4043  ;;  %v2647_v3 = vadd.f32 1.0, %v4042_v62 }
 0x722   :  { %4049 = vrcp.f32 %v2647_v3 }
 0x724   :  { %v4046_v0 = vpop.eup %4045 }
 0x725   :  { %v4048_v1 = vpop.eup %4047  ;;  %v2651_v2 = vmul.f32 %v4046_v0, %v4044_v63 }
 0x726   :  { %v2650_v4 = vmul.f32 %v4048_v1, %v4502_v39 }
 0x728   :  { %v4535_v5 = vadd.f32 %v2651_v2, %v2650_v4 }
 0x72a   :  { %4051 = vtanh.f32 %v4535_v5 }
 0x72c   :  { %v4050_v6 = vpop.eup %4049 }
 0x734   :  { %v4052_v7 = vpop.eup %4051 }
 0x735   :  { %v2654_v8 = vmul.f32 %v4052_v7, %v4050_v6 }
 0x737   :  { %2655 = vst.msk [vmem:[#allocation3 + $0x5] sm:$0x2] %vm758_vm4, %v2654_v8  ;;  %3689 = vmatmul.mubr.msk.f32.vlgmr.msra.gmra.mrb[30].mxu0 %vm146_vm3, %v2654_v8  ;;  %3700 = vmatmul.mubr.msk.f32.vlgmr.msra.gmra.mrb[34].mxu1 %vm146_vm3, %v2654_v8 }
 0x738   :  { %3917 = vmatpush3.bf16.msra.mxu0 %v4272_v24  ;;  %3923 = vmatpush3.bf16.msra.mxu1 %v4283_v30  ;;  %v2973_v24 = vld [vmem:[%s4605_s6] sm:$0xff]  ;;  %v2974_v30 = vld [vmem:[%s4605_s6 + $0x8] sm:$0xff] }
 0x739   :  { %3918 = vmatprep.subr.bf16.mxu0 %v4144_v14  ;;  %3924 = vmatprep.subr.bf16.mxu1 %v4144_v14 }
 0x73a   :  { %3710 = vmatprep.mubr.msk.f32.mxu0 %vm4145_vm2, %v4146_v21  ;;  %3721 = vmatprep.mubr.msk.f32.mxu1 %vm4145_vm2, %v4146_v21 }
 0x73c   :  { %3920 = vmatpush3.bf16.msra.mxu0 %v4281_v29  ;;  %3926 = vmatpush3.bf16.msra.mxu1 %v4292_v33  ;;  %v3928_v29 = vpack.c.bf16 %v2974_v30, %v2973_v24  ;;  %v2975_v33 = vld [vmem:[%s4605_s6 + $0x10] sm:$0xff]  ;;  %s4147_s6 = smov [#allocation8]  }
 0x73d   :  { %3927 = vmatprep.subr.bf16.mxu0 %v4144_v14  ;;  %v3931_v11 = vpack.c.bf16 %v2976_v10, %v2975_v33  ;;  %s3070_s13 = sshll.u32 %s4147_s6, 4  ;;  %s3071_s13 = int_to_ptr.vmem [resolvable:$true] %s3070_s13 }
 0x73e   :  { %s4091_s15 = scalar_lea.vmem %s3071_s13, 32  ;;  %p4096_p9 = scmp.lt.s32.totalorder %s3071_s13, %s3071_s13 }
 0x73f   :  { %3711 = vmatmul.mubr.msk.f32.vlgmr.msra.gmra.mrb[32].mxu0 %vm146_vm3, %v2654_v8  ;;  %3722 = vmatmul.mubr.msk.f32.vlgmr.msra.gmra.mrb[36].mxu1 %vm146_vm3, %v2654_v8  ;;  %p4092_p8 = scmp.ne.s32.totalorder %s3071_s13, %s4091_s15  ;;  %p4097_p10 = scmp.lt.s32.totalorder %s4091_s15, %s4091_s15 }
 0x740   :  { %3732 = vmatprep.mubr.msk.f32.mxu0 %vm4145_vm2, %v4146_v21  ;;  %3929 = vmatpush3.bf16.msra.mxu0 %v3928_v29  ;;  %v2656_v21 = vld [vmem:[#allocation2 + $0xe] sm:$0x3] }
 0x741   :  { %3930 = vmatprep.subr.bf16.mxu0 %v4144_v14  ;;  %v2815_v14 = vld [vmem:[#allocation2 + $0x2e] sm:$0x3]  ;;  %p4098_p11 = por %p4097_p10, %p4096_p9 }
 0x743   :  { %p4099_p12 = pnand %p4098_p11, %p4092_p8 }
 0x744   :  { %3932 = vmatpush3.bf16.msra.mxu0 %v3931_v11 }
 0x80a   :  { %v2726_v12 = vpop.f32.mrb[30].mxu0  ;;  %v2804_v17 = vpop.f32.mrb[34].mxu1 }
 0x80b   :  { %v2730_v18 = vadd.f32 %v2726_v12, %v2656_v21  ;;  %v2808_v19 = vadd.f32 %v2804_v17, %v2737_v13  ;;  %v3690_v20 = vpop.f32.mrb[31].mxu0  ;;  %v3701_v22 = vpop.f32.mrb[35].mxu1 }
 0x80d   :  { %v3167_v25 = vmul.f32 -1.442695, %v2730_v18  ;;  %v3169_v26 = vmul.f32 -1.442695, %v2808_v19 }
 0x80f   :  { %4053 = vpow2.f32 %v3167_v25 }
 0x810   :  { %4055 = vpow2.f32 %v3169_v26 }
 0x812   :  { %v2882_v27 = vpop.f32.mrb[32].mxu0  ;;  %v2955_v31 = vpop.f32.mrb[36].mxu1 }
 0x813   :  { %v2959_v32 = vadd.f32 %v2955_v31, %v2888_v28  ;;  %v3712_v34 = vpop.f32.mrb[33].mxu0  ;;  %v3723_v35 = vpop.f32.mrb[37].mxu1  ;;  %v2886_v37 = vadd.f32 %v2882_v27, %v2815_v14 }
 0x815   :  { %v3172_v36 = vmul.f32 -1.442695, %v2959_v32 }
 0x817   :  { %4057 = vpow2.f32 %v3172_v36 }
 0x818   :  { %4059 = vtanh.f32 %v2886_v37 }
 0x819   :  { %v4054_v38 = vpop.eup %4053 }
 0x81a   :  { %v4056_v39 = vpop.eup %4055  ;;  %v2734_v40 = vadd.f32 1.0, %v4054_v38 }
 0x81b   :  { %v2812_v41 = vadd.f32 1.0, %v4056_v39 }
 0x81c   :  { %4061 = vrcp.f32 %v2734_v40 }
 0x81d   :  { %4063 = vrcp.f32 %v2812_v41 }
 0x821   :  { %v4058_v42 = vpop.eup %4057 }
 0x822   :  { %v4060_v9 = vpop.eup %4059  ;;  %v2963_v45 = vadd.f32 1.0, %v4058_v42 }
 0x824   :  { %4065 = vrcp.f32 %v2963_v45 }
 0x826   :  { %v4062_v16 = vpop.eup %4061 }
 0x827   :  { %v4064_v43 = vpop.eup %4063  ;;  %v2967_v44 = vmul.f32 %v4062_v16, %v4060_v9 }
 0x828   :  { %v2966_v46 = vmul.f32 %v4064_v43, %v4535_v5 }
 0x82a   :  { %v2968_v47 = vadd.f32 %v2967_v44, %v2966_v46 }
 0x82c   :  { %4067 = vtanh.f32 %v2968_v47  ;;  %3061 = vst.msk [vmem:[#allocation9] sm:$0x3] %vm3059_vm5, %v2968_v47 }
 0x82e   :  { %v4066_v48 = vpop.eup %4065 }
 0x836   :  { %v4068_v49 = vpop.eup %4067 }
 0x837   :  { %v2970_v50 = vmul.f32 %v4068_v49, %v4066_v48 }
 0x839   :  { %2971 = vst.msk [vmem:[#allocation3 + $0x6] sm:$0x2] %vm758_vm4, %v2970_v50 }
 0x83a   :  { %3060 = vst.msk [vmem:[#allocation8] sm:$0x3] %vm3059_vm5, %v2970_v50 }
 0x840   :  { %v2972_v51 = vld [vmem:[#allocation3] sm:$0xff] }
 0x841   :  { %3733 = vmatmul.mubr.msk.f32.vlgmr.msra.gmra.mrb[34].mxu0 %vm146_vm3, %v2972_v51 }
 0x842   :  { %4102 = shalt.err (!%p4099_p12)
}
 0x843   :  { %s4103_s17 = scalar_lea.hbm %s4608_s9, 32 }
 0x844   :  { %p4104_p13 = scmp.ne.s32.totalorder %s4608_s9, %s4103_s17  ;;  %p4107_p0 = scmp.lt.u32.totalorder %s4103_s17, %s4608_s9 }
 0x846   :  { %p4109_p1 = pnand %p4107_p0, %p4104_p13 }
 0x848   :  { %4112 = shalt.err (!%p4109_p1)
}
 0x849   :  { %3073 = dma.vmem_to_hbm [thread:$0]  %s3071_s13, 32, %s4608_s9, [#allocation7]  }
 0x84a   :  { %s4113_s22 = scalar_lea.vmem %s3081_s14, 32  ;;  %p4118_p3 = scmp.lt.s32.totalorder %s3081_s14, %s3081_s14 }
 0x84b   :  { %p4114_p2 = scmp.ne.s32.totalorder %s3081_s14, %s4113_s22  ;;  %p4119_p4 = scmp.lt.s32.totalorder %s4113_s22, %s4113_s22 }
 0x84d   :  { %p4120_p5 = por %p4119_p4, %p4118_p3 }
 0x84f   :  { %p4121_p6 = pnand %p4120_p5, %p4114_p2 }
 0x851   :  { %4124 = shalt.err (!%p4121_p6)
}
 0x852   :  { %s4125_s24 = scalar_lea.hbm %s4609_s10, 32 }
 0x853   :  { %p4126_p7 = scmp.ne.s32.totalorder %s4609_s10, %s4125_s24  ;;  %p4129_p8 = scmp.lt.u32.totalorder %s4125_s24, %s4609_s10 }
 0x855   :  { %p4131_p9 = pnand %p4129_p8, %p4126_p7 }
 0x857   :  { %4134 = shalt.err (!%p4131_p9)
}
 0x858   :  { %3083 = dma.vmem_to_hbm [thread:$0]  %s3081_s14, 32, %s4609_s10, [#allocation10]   ;;  %v3173_v15 = vld [vmem:[#allocation4] ss:$0 sm:$0xff]  ;;  %vm3057_vm6 = vcmask 7168  }
 0x914   :  { %v3053_v52 = vpop.f32.mrb[34].mxu0 }
 0x915   :  { %v3054_v23 = vadd.f32 %v3173_v15, %v3053_v52  ;;  %v3734_v53 = vpop.f32.mrb[35].mxu0 }
 0x917   :  { %3058 = vst.msk [vmem:[%s4607_s8] sm:$0xff] %vm3057_vm6, %v3054_v23 }
 0x918   :  { %4137 = dma.done.wait [#allocation7], 32  }
 0x919   :  { %4138 = vsyncadd [#allocation7], 4294967264 }
 0x91a   :  { %4139 = dma.done.wait [#allocation10], 32  }
 0x91b   :  { %4140 = vsyncadd [#allocation10], 4294967264 }
 0x91c   :  { %3092 = vsyncpa [#allocation6], 1 }
 0x91d   :  { %3093 = vsyncpa [#allocation7], 1 }
 0x91e   :  { %3094 = vsyncpa [#allocation10], 1 }

</bundles_post_ra>
